<compile_context>
chip_gen: v6e
topology: v6e:2x2x1
jax: 0.10.0
libtpu: 0.0.40
codegen_flags: <defaults>
</compile_context>

<pallas_src>
import functools

import jax
import jax.numpy as jnp
from jax import lax
from jax.experimental import pallas as pl
from jax.experimental.pallas import tpu as pltpu

# ------------------------------- configuration ------------------------------
BATCH = 2
IN_CH = 32            # in_channels
OUT_CH = 16           # out_channels
IN_H = IN_W = 8       # pre-upsample spatial size
OHEIGHT = OWIDTH = 16 # oheight / owidth (post 2x up-pool)

_PAD_LANES = 128      # left/right zero pad (lanes) of the conv2 scratch.
                      # Must be >= owidth + 1 and a multiple of 128 so the
                      # interior store stays lane-aligned.


# ------------------------------- Pallas kernel -------------------------------
def _fused_block_kernel(a_ref, w1_ref, s1_ref, w2_ref, s2_ref, o_ref, pad_ref,
                        *, ow, m, cout):
    """One image per grid step. Shapes (all per block):
         a_ref  : (K, m)        bf16   5x5 im2col of the up-pooled input (transposed)
         w1_ref : (2*cout, K)   bf16   [conv1 ; sc_conv1] weights, BN scale folded
         s1_ref : (2*cout, 1)   f32    [bn1_shift ; sc_bn1_shift]
         w2_ref : (9*cout, cout) bf16  conv2 weights, rows = (tap, cout), cols = cin
         s2_ref : (cout, 1)     f32    bn2_shift
         o_ref  : (cout, m)     f32    final block output (transposed layout)
         pad_ref: (cout, 2*_PAD_LANES + m) bf16 VMEM scratch (zero-padded y1)
    """
    # ---- stage 1: conv1 (5x5) and sc_conv1 (5x5) as ONE transposed matmul ----
    y = jnp.dot(w1_ref[...], a_ref[...], preferred_element_type=jnp.float32)
    y = y + s1_ref[...]                              # (2*cout, m)
    y1 = jnp.maximum(y[:cout, :], 0.0)               # relu(bn1(conv1(x)))
    acc = y[cout:, :] + s2_ref[...]                  # shortcut + bn2 shift

    # ---- stage 2: conv2 (3x3, pad 1) via zero-padded scratch + 9 shifted taps
    pad_ref[...] = jnp.zeros_like(pad_ref)
    pad_ref[:, _PAD_LANES:_PAD_LANES + m] = y1.astype(jnp.bfloat16)

    col = lax.broadcasted_iota(jnp.int32, (cout, m), 1) % ow
    ok_left = col > 0            # a (w-1) neighbour exists
    ok_right = col < (ow - 1)    # a (w+1) neighbour exists

    tap = 0
    for dh in (-1, 0, 1):
        for dw in (-1, 0, 1):
            delta = dh * ow + dw
            sh = pad_ref[:, _PAD_LANES + delta:_PAD_LANES + delta + m]
            if dw == -1:
                sh = jnp.where(ok_left, sh, 0)
            elif dw == 1:
                sh = jnp.where(ok_right, sh, 0)
            wtap = w2_ref[tap * cout:(tap + 1) * cout, :]   # (cout, cin) bf16
            acc = acc + jnp.dot(wtap, sh, preferred_element_type=jnp.float32)
            tap += 1

    o_ref[...] = jnp.maximum(acc, 0.0).astype(o_ref.dtype)


def fused_gudi_block(a_t, w_cat_t, s_cat, w2_t, s2_col, *, n, oh, ow, cout):
    k, total_m = a_t.shape
    m = oh * ow
    assert total_m == n * m
    # Per-image block is the lane dim of every tensor in the kernel.
    assert m % 128 == 0, "per-image spatial size must be a multiple of 128"

    kernel = functools.partial(_fused_block_kernel, ow=ow, m=m, cout=cout)
    return pl.pallas_call(
        kernel,
        out_shape=jax.ShapeDtypeStruct((cout, n * m), jnp.float32),
        grid_spec=pltpu.PrefetchScalarGridSpec(
            num_scalar_prefetch=0,
            grid=(n,),
            in_specs=[
                pl.BlockSpec((k, m), lambda i: (0, i)),
                pl.BlockSpec((2 * cout, k), lambda i: (0, 0)),
                pl.BlockSpec((2 * cout, 1), lambda i: (0, 0)),
                pl.BlockSpec((9 * cout, cout), lambda i: (0, 0)),
                pl.BlockSpec((cout, 1), lambda i: (0, 0)),
            ],
            out_specs=pl.BlockSpec((cout, m), lambda i: (0, i)),
            scratch_shapes=[pltpu.VMEM((cout, 2 * _PAD_LANES + m), jnp.bfloat16)],
        ),
        compiler_params=pltpu.CompilerParams(dimension_semantics=("parallel",)),
    )(a_t, w_cat_t, s_cat, w2_t, s2_col)


# --------------------------------- JAX glue ----------------------------------
def up_pool(x, oh, ow):
    """nn.Upsample(x2, nearest) -> crop to (oh, ow) -> keep only (even, even)
    positions.  Equivalent to zero-stuffing the original values at stride 2."""
    n, h, w, c = x.shape
    y = jnp.zeros((n, 2 * h, 2 * w, c), x.dtype).at[:, ::2, ::2, :].set(x)
    return y[:, :oh, :ow, :]


def _im2col_t(x, kh, kw, padding):
    """Stride-1 im2col (NHWC), returned transposed: (kh*kw*cin, n*oh*ow)."""
    n, h, w, c = x.shape
    oh = h + 2 * padding - (kh - 1)
    ow = w + 2 * padding - (kw - 1)
    xp = jnp.pad(x, ((0, 0), (padding, padding), (padding, padding), (0, 0)))
    cols = [xp[:, i:i + oh, j:j + ow, :] for i in range(kh) for j in range(kw)]
    a = jnp.concatenate(cols, axis=-1).reshape(n * oh * ow, kh * kw * c)
    return a.T, oh, ow


def gudi_up_proj_block_fwd(params, x_nchw, *, oheight, owidth):
    x = jnp.transpose(x_nchw, (0, 2, 3, 1)).astype(jnp.float32)   # NCHW -> NHWC
    x = up_pool(x, oheight, owidth)
    n = x.shape[0]
    cout = params['s2_col'].shape[0]

    # TODO(synk): the up-pooled input is 3/4 zeros (zero-stuffing); a sub-pixel
    #             decomposition could skip those MACs but is not worth the
    #             complexity at these sizes.
    a_t, oh, ow = _im2col_t(x.astype(jnp.bfloat16), 5, 5, 2)

    out_t = fused_gudi_block(a_t, params['w_cat_t'], params['s_cat'],
                             params['w2_t'], params['s2_col'],
                             n=n, oh=oh, ow=ow, cout=cout)
    # (cout, n*oh*ow) -> NCHW
    return out_t.reshape(cout, n, oh, ow).transpose(1, 0, 2, 3)


# ------------------------------- parameter init ------------------------------
def _conv_init(key, kh, kw, cin, cout):
    std = (2.0 / (kh * kw * cin)) ** 0.5
    return jax.random.normal(key, (kh, kw, cin, cout), jnp.float32) * std


def _bn_init(key, c):
    # eval-mode BatchNorm folded to per-channel affine: y = x*scale + shift
    k1, k2, k3, k4 = jax.random.split(key, 4)
    gamma = 1.0 + 0.1 * jax.random.normal(k1, (c,), jnp.float32)
    beta = 0.1 * jax.random.normal(k2, (c,), jnp.float32)
    mean = 0.1 * jax.random.normal(k3, (c,), jnp.float32)
    var = 1.0 + 0.1 * jax.random.uniform(k4, (c,), jnp.float32)
    scale = gamma / jnp.sqrt(var + 1e-5)
    return {'scale': scale, 'shift': beta - mean * scale}


def init_params(key, cin, cout):
    ks = jax.random.split(key, 6)
    w1, bn1 = _conv_init(ks[0], 5, 5, cin, cout), _bn_init(ks[1], cout)
    w2, bn2 = _conv_init(ks[2], 3, 3, cout, cout), _bn_init(ks[3], cout)
    wsc, sc_bn1 = _conv_init(ks[4], 5, 5, cin, cout), _bn_init(ks[5], cout)

    def fold(w, bn):
        kh, kw, ci, co = w.shape
        return w.reshape(kh * kw * ci, co) * bn['scale'][None, :]

    # Stage 1: [conv1 | sc_conv1] packed along cout, transposed so cout is on
    # sublanes and the (kh,kw,cin) contraction is on lanes.
    w_cat_t = jnp.concatenate([fold(w1, bn1), fold(wsc, sc_bn1)], axis=1).T
    s_cat = jnp.concatenate([bn1['shift'], sc_bn1['shift']]).reshape(2 * cout, 1)

    # Stage 2: (3,3,cin,cout) folded -> (9, cin, cout) -> (9, cout, cin) -> 2D.
    w2f = fold(w2, bn2).reshape(9, cout, cout)                 # (tap, cin, cout)
    w2_t = jnp.transpose(w2f, (0, 2, 1)).reshape(9 * cout, cout)
    s2_col = bn2['shift'].reshape(cout, 1)

    return {
        # raw parameters (used only by the pure-JAX reference)
        'w1': w1, 'bn1': bn1, 'w2': w2, 'bn2': bn2, 'wsc': wsc, 'sc_bn1': sc_bn1,
        # kernel-ready packed / folded parameters
        'w_cat_t': w_cat_t.astype(jnp.bfloat16),
        's_cat': s_cat.astype(jnp.float32),
        'w2_t': w2_t.astype(jnp.bfloat16),
        's2_col': s2_col.astype(jnp.float32),
    }


# ------------------------------ pure-JAX reference ---------------------------
def reference_fwd(params, x_nchw, oheight, owidth):
    x = jnp.transpose(x_nchw, (0, 2, 3, 1)).astype(jnp.float32)
    x = up_pool(x, oheight, owidth)

    def conv(v, w, pad):
        return lax.conv_general_dilated(
            v, w, window_strides=(1, 1), padding=[(pad, pad), (pad, pad)],
            dimension_numbers=('NHWC', 'HWIO', 'NHWC'),
            precision=lax.Precision.HIGHEST)

    def bn(v, p):
        return v * p['scale'] + p['shift']

    out = jnp.maximum(bn(conv(x, params['w1'], 2), params['bn1']), 0.0)
    out = bn(conv(out, params['w2'], 1), params['bn2'])
    sc = bn(conv(x, params['wsc'], 2), params['sc_bn1'])
    return jnp.transpose(jnp.maximum(out + sc, 0.0), (0, 3, 1, 2))


# ------------------------------------ main -----------------------------------
if __name__ == "__main__":
    root = jax.random.PRNGKey(0)
    kp, kx = jax.random.split(root)
    params = init_params(kp, IN_CH, OUT_CH)
    x = jax.random.normal(kx, (BATCH, IN_CH, IN_H, IN_W), jnp.float32)

    fwd = jax.jit(functools.partial(gudi_up_proj_block_fwd,
                                    oheight=OHEIGHT, owidth=OWIDTH))
    out = fwd(params, x)
    jax.block_until_ready(out)

    assert out.shape == (BATCH, OUT_CH, OHEIGHT, OWIDTH), out.shape
    assert bool(jnp.all(jnp.isfinite(out)))

    ref = reference_fwd(params, x, OHEIGHT, OWIDTH)
    rel_err = float(jnp.max(jnp.abs(out - ref)) / (jnp.max(jnp.abs(ref)) + 1e-6))
    assert rel_err < 5e-2, f"mismatch vs reference, rel_err={rel_err}"

    print("KERNEL_OK")
</pallas_src>

<mosaic_0001>
module attributes {stable_mosaic.version = 11 : i64} {
  func.func @_fused_block_kernel(%arg0: i32, %arg1: memref<800x256xbf16, #tpu.memory_space<vmem>>, %arg2: memref<32x800xbf16, #tpu.memory_space<vmem>>, %arg3: memref<32x1xf32, #tpu.memory_space<vmem>>, %arg4: memref<144x16xbf16, #tpu.memory_space<vmem>>, %arg5: memref<16x1xf32, #tpu.memory_space<vmem>>, %arg6: memref<16x256xf32, #tpu.memory_space<vmem>>, %arg7: memref<16x512xbf16, #tpu.memory_space<vmem>>) attributes {dimension_semantics = [#tpu.dimension_semantics<parallel>], iteration_bounds = array<i64: 2>, scalar_prefetch = 0 : i64, scratch_operands = 1 : i64, tpu.core_type = #tpu.core_type<tc>, window_params = [{transform_indices = @transform_0, window_bounds = array<i64: 800, 256>}, {pipeline_mode = #tpu.pipeline_mode<synchronous>, transform_indices = @transform_1, window_bounds = array<i64: 32, 800>}, {pipeline_mode = #tpu.pipeline_mode<synchronous>, transform_indices = @transform_2, window_bounds = array<i64: 32, 1>}, {pipeline_mode = #tpu.pipeline_mode<synchronous>, transform_indices = @transform_3, window_bounds = array<i64: 144, 16>}, {pipeline_mode = #tpu.pipeline_mode<synchronous>, transform_indices = @transform_4, window_bounds = array<i64: 16, 1>}, {transform_indices = @transform_5, window_bounds = array<i64: 16, 256>}]} {
    %c0 = arith.constant 0 : index
    %c0_0 = arith.constant 0 : index
    %0 = vector.load %arg2[%c0, %c0_0] : memref<32x800xbf16, #tpu.memory_space<vmem>>, vector<32x800xbf16>
    %c0_1 = arith.constant 0 : index
    %c0_2 = arith.constant 0 : index
    %1 = vector.load %arg1[%c0_1, %c0_2] : memref<800x256xbf16, #tpu.memory_space<vmem>>, vector<800x256xbf16>
    %cst = arith.constant dense<0.000000e+00> : vector<32x256xf32>
    %2 = tpu.matmul %0, %1, %cst {dimension_numbers = #tpu.dot_dimension_numbers<[1], [0], [0], [1], [0, 0, 1, 1], [], []>} : vector<32x800xbf16>, vector<800x256xbf16>, vector<32x256xf32> -> vector<32x256xf32>
    %c0_3 = arith.constant 0 : index
    %c0_4 = arith.constant 0 : index
    %3 = vector.load %arg3[%c0_3, %c0_4] : memref<32x1xf32, #tpu.memory_space<vmem>>, vector<32x1xf32>
    %4 = vector.broadcast %3 : vector<32x1xf32> to vector<32x256xf32>
    %5 = arith.addf %2, %4 : vector<32x256xf32>
    %6 = vector.extract_strided_slice %5 {offsets = [0, 0], sizes = [16, 256], strides = [1, 1]} : vector<32x256xf32> to vector<16x256xf32>
    %cst_5 = arith.constant 0.000000e+00 : f32
    %7 = vector.broadcast %cst_5 : f32 to vector<16x256xf32>
    %8 = arith.maximumf %6, %7 : vector<16x256xf32>
    %9 = vector.extract_strided_slice %5 {offsets = [16, 0], sizes = [16, 256], strides = [1, 1]} : vector<32x256xf32> to vector<16x256xf32>
    %c0_6 = arith.constant 0 : index
    %c0_7 = arith.constant 0 : index
    %10 = vector.load %arg5[%c0_6, %c0_7] : memref<16x1xf32, #tpu.memory_space<vmem>>, vector<16x1xf32>
    %11 = vector.broadcast %10 : vector<16x1xf32> to vector<16x256xf32>
    %12 = arith.addf %9, %11 : vector<16x256xf32>
    %cst_8 = arith.constant 0.000000e+00 : bf16
    %13 = vector.broadcast %cst_8 : bf16 to vector<16x512xbf16>
    %c0_9 = arith.constant 0 : index
    %c0_10 = arith.constant 0 : index
    %14 = vector.load %arg7[%c0_9, %c0_10] : memref<16x512xbf16, #tpu.memory_space<vmem>>, vector<16x512xbf16>
    tpu.vector_store %arg7[%c0_9, %c0_10], %13 {strides = array<i32>} : memref<16x512xbf16, #tpu.memory_space<vmem>>, vector<16x512xbf16>,
    %15 = arith.truncf %8 : vector<16x256xf32> to vector<16x256xbf16>
    %c0_11 = arith.constant 0 : index
    %c128 = arith.constant 128 : index
    %16 = vector.load %arg7[%c0_11, %c128] : memref<16x512xbf16, #tpu.memory_space<vmem>>, vector<16x256xbf16>
    tpu.vector_store %arg7[%c0_11, %c128], %15 {strides = array<i32>} : memref<16x512xbf16, #tpu.memory_space<vmem>>, vector<16x256xbf16>,
    %17 = tpu.iota {dimensions = array<i32: 1>} : vector<16x256xi32>
    %c16_i32 = arith.constant 16 : i32
    %c0_i32 = arith.constant 0 : i32
    %18 = arith.cmpi eq, %c16_i32, %c0_i32 : i32
    %c1_i32 = arith.constant 1 : i32
    %19 = arith.select %18, %c1_i32, %c16_i32 : i32
    %20 = vector.broadcast %19 : i32 to vector<16x256xi32>
    %21 = arith.remsi %17, %20 : vector<16x256xi32>
    %c0_i32_12 = arith.constant 0 : i32
    %22 = vector.broadcast %c0_i32_12 : i32 to vector<16x256xi32>
    %23 = arith.cmpi ne, %21, %22 : vector<16x256xi32>
    %c0_i32_13 = arith.constant 0 : i32
    %24 = vector.broadcast %c0_i32_13 : i32 to vector<16x256xi32>
    %25 = arith.cmpi slt, %21, %24 : vector<16x256xi32>
    %c0_i32_14 = arith.constant 0 : i32
    %26 = arith.cmpi slt, %19, %c0_i32_14 : i32
    %27 = vector.broadcast %26 : i1 to vector<16x256xi1>
    %28 = vector.broadcast %27 : vector<16x256xi1> to vector<16x256xi1>
    %29 = arith.xori %25, %28 : vector<16x256xi1>
    %30 = arith.andi %29, %23 : vector<16x256xi1>
    %31 = vector.broadcast %19 : i32 to vector<16x256xi32>
    %32 = arith.addi %21, %31 : vector<16x256xi32>
    %33 = arith.select %30, %32, %21 : vector<16x256xi1>, vector<16x256xi32>
    %c0_i32_15 = arith.constant 0 : i32
    %34 = vector.broadcast %c0_i32_15 : i32 to vector<16x256xi32>
    %35 = arith.cmpi sgt, %33, %34 : vector<16x256xi32>
    %c15_i32 = arith.constant 15 : i32
    %36 = vector.broadcast %c15_i32 : i32 to vector<16x256xi32>
    %37 = arith.cmpi slt, %33, %36 : vector<16x256xi32>
    %c0_16 = arith.constant 0 : index
    %c111 = arith.constant 111 : index
    %38 = vector.load %arg7[%c0_16, %c111] : memref<16x512xbf16, #tpu.memory_space<vmem>>, vector<16x256xbf16>
    %c0_i32_17 = arith.constant 0 : i32
    %39 = arith.sitofp %c0_i32_17 : i32 to bf16
    %40 = vector.broadcast %39 : bf16 to vector<16x256xbf16>
    %41 = arith.select %35, %38, %40 : vector<16x256xi1>, vector<16x256xbf16>
    %c0_18 = arith.constant 0 : index
    %c0_19 = arith.constant 0 : index
    %42 = vector.load %arg4[%c0_18, %c0_19] : memref<144x16xbf16, #tpu.memory_space<vmem>>, vector<16x16xbf16>
    %cst_20 = arith.constant dense<0.000000e+00> : vector<16x256xf32>
    %43 = tpu.matmul %42, %41, %cst_20 {dimension_numbers = #tpu.dot_dimension_numbers<[1], [0], [0], [1], [0, 0, 1, 1], [], []>} : vector<16x16xbf16>, vector<16x256xbf16>, vector<16x256xf32> -> vector<16x256xf32>
    %44 = arith.addf %12, %43 : vector<16x256xf32>
    %c0_21 = arith.constant 0 : index
    %c112 = arith.constant 112 : index
    %45 = vector.load %arg7[%c0_21, %c112] : memref<16x512xbf16, #tpu.memory_space<vmem>>, vector<16x256xbf16>
    %c16 = arith.constant 16 : index
    %c0_22 = arith.constant 0 : index
    %46 = vector.load %arg4[%c16, %c0_22] : memref<144x16xbf16, #tpu.memory_space<vmem>>, vector<16x16xbf16>
    %cst_23 = arith.constant dense<0.000000e+00> : vector<16x256xf32>
    %47 = tpu.matmul %46, %45, %cst_23 {dimension_numbers = #tpu.dot_dimension_numbers<[1], [0], [0], [1], [0, 0, 1, 1], [], []>} : vector<16x16xbf16>, vector<16x256xbf16>, vector<16x256xf32> -> vector<16x256xf32>
    %48 = arith.addf %44, %47 : vector<16x256xf32>
    %c0_24 = arith.constant 0 : index
    %c113 = arith.constant 113 : index
    %49 = vector.load %arg7[%c0_24, %c113] : memref<16x512xbf16, #tpu.memory_space<vmem>>, vector<16x256xbf16>
    %c0_i32_25 = arith.constant 0 : i32
    %50 = arith.sitofp %c0_i32_25 : i32 to bf16
    %51 = vector.broadcast %50 : bf16 to vector<16x256xbf16>
    %52 = arith.select %37, %49, %51 : vector<16x256xi1>, vector<16x256xbf16>
    %c32 = arith.constant 32 : index
    %c0_26 = arith.constant 0 : index
    %53 = vector.load %arg4[%c32, %c0_26] : memref<144x16xbf16, #tpu.memory_space<vmem>>, vector<16x16xbf16>
    %cst_27 = arith.constant dense<0.000000e+00> : vector<16x256xf32>
    %54 = tpu.matmul %53, %52, %cst_27 {dimension_numbers = #tpu.dot_dimension_numbers<[1], [0], [0], [1], [0, 0, 1, 1], [], []>} : vector<16x16xbf16>, vector<16x256xbf16>, vector<16x256xf32> -> vector<16x256xf32>
    %55 = arith.addf %48, %54 : vector<16x256xf32>
    %c0_28 = arith.constant 0 : index
    %c127 = arith.constant 127 : index
    %56 = vector.load %arg7[%c0_28, %c127] : memref<16x512xbf16, #tpu.memory_space<vmem>>, vector<16x256xbf16>
    %c0_i32_29 = arith.constant 0 : i32
    %57 = arith.sitofp %c0_i32_29 : i32 to bf16
    %58 = vector.broadcast %57 : bf16 to vector<16x256xbf16>
    %59 = arith.select %35, %56, %58 : vector<16x256xi1>, vector<16x256xbf16>
    %c48 = arith.constant 48 : index
    %c0_30 = arith.constant 0 : index
    %60 = vector.load %arg4[%c48, %c0_30] : memref<144x16xbf16, #tpu.memory_space<vmem>>, vector<16x16xbf16>
    %cst_31 = arith.constant dense<0.000000e+00> : vector<16x256xf32>
    %61 = tpu.matmul %60, %59, %cst_31 {dimension_numbers = #tpu.dot_dimension_numbers<[1], [0], [0], [1], [0, 0, 1, 1], [], []>} : vector<16x16xbf16>, vector<16x256xbf16>, vector<16x256xf32> -> vector<16x256xf32>
    %62 = arith.addf %55, %61 : vector<16x256xf32>
    %c0_32 = arith.constant 0 : index
    %c128_33 = arith.constant 128 : index
    %63 = vector.load %arg7[%c0_32, %c128_33] : memref<16x512xbf16, #tpu.memory_space<vmem>>, vector<16x256xbf16>
    %c64 = arith.constant 64 : index
    %c0_34 = arith.constant 0 : index
    %64 = vector.load %arg4[%c64, %c0_34] : memref<144x16xbf16, #tpu.memory_space<vmem>>, vector<16x16xbf16>
    %cst_35 = arith.constant dense<0.000000e+00> : vector<16x256xf32>
    %65 = tpu.matmul %64, %63, %cst_35 {dimension_numbers = #tpu.dot_dimension_numbers<[1], [0], [0], [1], [0, 0, 1, 1], [], []>} : vector<16x16xbf16>, vector<16x256xbf16>, vector<16x256xf32> -> vector<16x256xf32>
    %66 = arith.addf %62, %65 : vector<16x256xf32>
    %c0_36 = arith.constant 0 : index
    %c129 = arith.constant 129 : index
    %67 = vector.load %arg7[%c0_36, %c129] : memref<16x512xbf16, #tpu.memory_space<vmem>>, vector<16x256xbf16>
    %c0_i32_37 = arith.constant 0 : i32
    %68 = arith.sitofp %c0_i32_37 : i32 to bf16
    %69 = vector.broadcast %68 : bf16 to vector<16x256xbf16>
    %70 = arith.select %37, %67, %69 : vector<16x256xi1>, vector<16x256xbf16>
    %c80 = arith.constant 80 : index
    %c0_38 = arith.constant 0 : index
    %71 = vector.load %arg4[%c80, %c0_38] : memref<144x16xbf16, #tpu.memory_space<vmem>>, vector<16x16xbf16>
    %cst_39 = arith.constant dense<0.000000e+00> : vector<16x256xf32>
    %72 = tpu.matmul %71, %70, %cst_39 {dimension_numbers = #tpu.dot_dimension_numbers<[1], [0], [0], [1], [0, 0, 1, 1], [], []>} : vector<16x16xbf16>, vector<16x256xbf16>, vector<16x256xf32> -> vector<16x256xf32>
    %73 = arith.addf %66, %72 : vector<16x256xf32>
    %c0_40 = arith.constant 0 : index
    %c143 = arith.constant 143 : index
    %74 = vector.load %arg7[%c0_40, %c143] : memref<16x512xbf16, #tpu.memory_space<vmem>>, vector<16x256xbf16>
    %c0_i32_41 = arith.constant 0 : i32
    %75 = arith.sitofp %c0_i32_41 : i32 to bf16
    %76 = vector.broadcast %75 : bf16 to vector<16x256xbf16>
    %77 = arith.select %35, %74, %76 : vector<16x256xi1>, vector<16x256xbf16>
    %c96 = arith.constant 96 : index
    %c0_42 = arith.constant 0 : index
    %78 = vector.load %arg4[%c96, %c0_42] : memref<144x16xbf16, #tpu.memory_space<vmem>>, vector<16x16xbf16>
    %cst_43 = arith.constant dense<0.000000e+00> : vector<16x256xf32>
    %79 = tpu.matmul %78, %77, %cst_43 {dimension_numbers = #tpu.dot_dimension_numbers<[1], [0], [0], [1], [0, 0, 1, 1], [], []>} : vector<16x16xbf16>, vector<16x256xbf16>, vector<16x256xf32> -> vector<16x256xf32>
    %80 = arith.addf %73, %79 : vector<16x256xf32>
    %c0_44 = arith.constant 0 : index
    %c144 = arith.constant 144 : index
    %81 = vector.load %arg7[%c0_44, %c144] : memref<16x512xbf16, #tpu.memory_space<vmem>>, vector<16x256xbf16>
    %c112_45 = arith.constant 112 : index
    %c0_46 = arith.constant 0 : index
    %82 = vector.load %arg4[%c112_45, %c0_46] : memref<144x16xbf16, #tpu.memory_space<vmem>>, vector<16x16xbf16>
    %cst_47 = arith.constant dense<0.000000e+00> : vector<16x256xf32>
    %83 = tpu.matmul %82, %81, %cst_47 {dimension_numbers = #tpu.dot_dimension_numbers<[1], [0], [0], [1], [0, 0, 1, 1], [], []>} : vector<16x16xbf16>, vector<16x256xbf16>, vector<16x256xf32> -> vector<16x256xf32>
    %84 = arith.addf %80, %83 : vector<16x256xf32>
    %c0_48 = arith.constant 0 : index
    %c145 = arith.constant 145 : index
    %85 = vector.load %arg7[%c0_48, %c145] : memref<16x512xbf16, #tpu.memory_space<vmem>>, vector<16x256xbf16>
    %c0_i32_49 = arith.constant 0 : i32
    %86 = arith.sitofp %c0_i32_49 : i32 to bf16
    %87 = vector.broadcast %86 : bf16 to vector<16x256xbf16>
    %88 = arith.select %37, %85, %87 : vector<16x256xi1>, vector<16x256xbf16>
    %c128_50 = arith.constant 128 : index
    %c0_51 = arith.constant 0 : index
    %89 = vector.load %arg4[%c128_50, %c0_51] : memref<144x16xbf16, #tpu.memory_space<vmem>>, vector<16x16xbf16>
    %cst_52 = arith.constant dense<0.000000e+00> : vector<16x256xf32>
    %90 = tpu.matmul %89, %88, %cst_52 {dimension_numbers = #tpu.dot_dimension_numbers<[1], [0], [0], [1], [0, 0, 1, 1], [], []>} : vector<16x16xbf16>, vector<16x256xbf16>, vector<16x256xf32> -> vector<16x256xf32>
    %91 = arith.addf %84, %90 : vector<16x256xf32>
    %cst_53 = arith.constant 0.000000e+00 : f32
    %92 = vector.broadcast %cst_53 : f32 to vector<16x256xf32>
    %93 = arith.maximumf %91, %92 : vector<16x256xf32>
    %c0_54 = arith.constant 0 : index
    %c0_55 = arith.constant 0 : index
    %94 = vector.load %arg6[%c0_54, %c0_55] : memref<16x256xf32, #tpu.memory_space<vmem>>, vector<16x256xf32>
    tpu.vector_store %arg6[%c0_54, %c0_55], %93 {strides = array<i32>} : memref<16x256xf32, #tpu.memory_space<vmem>>, vector<16x256xf32>,
    return
  }
  func.func @transform_0(%arg0: i32) -> (i32, i32) {
    %c0_i32 = arith.constant 0 : i32
    %c0_i32_0 = arith.constant 0 : i32
    return %c0_i32, %arg0 : i32, i32
  }
  func.func @transform_1(%arg0: i32) -> (i32, i32) {
    %c0_i32 = arith.constant 0 : i32
    %c0_i32_0 = arith.constant 0 : i32
    %c0_i32_1 = arith.constant 0 : i32
    return %c0_i32, %c0_i32_0 : i32, i32
  }
  func.func @transform_2(%arg0: i32) -> (i32, i32) {
    %c0_i32 = arith.constant 0 : i32
    %c0_i32_0 = arith.constant 0 : i32
    %c0_i32_1 = arith.constant 0 : i32
    return %c0_i32, %c0_i32_0 : i32, i32
  }
  func.func @transform_3(%arg0: i32) -> (i32, i32) {
    %c0_i32 = arith.constant 0 : i32
    %c0_i32_0 = arith.constant 0 : i32
    %c0_i32_1 = arith.constant 0 : i32
    return %c0_i32, %c0_i32_0 : i32, i32
  }
  func.func @transform_4(%arg0: i32) -> (i32, i32) {
    %c0_i32 = arith.constant 0 : i32
    %c0_i32_0 = arith.constant 0 : i32
    %c0_i32_1 = arith.constant 0 : i32
    return %c0_i32, %c0_i32_0 : i32, i32
  }
  func.func @transform_5(%arg0: i32) -> (i32, i32) {
    %c0_i32 = arith.constant 0 : i32
    %c0_i32_0 = arith.constant 0 : i32
    return %c0_i32, %arg0 : i32, i32
  }
}

</mosaic_0001>

<bundles_post_ra>
// kernel: gudi_up_proj_block_fwd.1
= control target key start
LH: loop header
LB: loop body
LE: loop exit
PB: predicated region body
PF: predicated region fallthrough
CT: control target
= control target key end

     0   :  { %s3002_s18 = smov 0   ;;  %s3004_s19 = smov 0   ;;  %s3649_s0 = inlined_call_operand.vmem [shape: bf16[800,512], index: 0, kind: input, shape index: {}]   ;;  %s3650_s1 = inlined_call_operand.vmem [shape: bf16[32,800], index: 1, kind: input, shape index: {}]   ;;  %s3651_s2 = inlined_call_operand.vmem [shape: f32[32,1], index: 2, kind: input, shape index: {}]   ;;  %s3652_s3 = inlined_call_operand.vmem [shape: bf16[144,16], index: 3, kind: input, shape index: {}]   ;;  %s3653_s4 = inlined_call_operand.vmem [shape: f32[16,1], index: 4, kind: input, shape index: {}]   ;;  %s3654_s5 = inlined_call_operand.vmem [shape: f32[16,512], index: 5, kind: output, shape index: {}]  }
   0x1   :  { %s3006_s20 = smov 0  }
   0x2 LB: > { %s2541_s21 = sadd.s32 4294967295, %s2961_s20   ;;  %s3019_s22 = sadd.s32 1, %s2961_s20   ;;  %s2961_s20 = sphi %s3006_s20, %s3670_s20   ;;  %s2957_s19 = sphi %s3004_s19, %s3669_s19   ;;  %s2953_s18 = sphi %s3002_s18, %s3668_s18  }
   0x3   : > { %s19_s23 = ssub.s32 %s2961_s20, %s3019_s22  ;;  %s22_s24 = sadd.s32 1, %s2957_s19 }
   0x4   : > { %p20_p0 = scmp.eq.s32.totalorder %s19_s23, 0  ;;  %p29_p1 = scmp.ne.s32.totalorder %s2957_s19, %s2953_s18 }
   0x5   : > { %p30_p2 = scmp.eq.s32.totalorder %s2961_s20, 0  ;;  %p143_p3 = scmp.eq.s32.totalorder %s2541_s21, 1 }
   0x6   : > { %s3030_s25 = scalar_select %p20_p0, %s2957_s19, %s22_s24  }
   0x7   : > { %p31_p4 = por %p30_p2, %p29_p1  ;;  %p3032_p5 = por %p143_p3, %p29_p1 }
   0x8   : > { %p2544_p6 = scmp.ge.s32.totalorder %s2961_s20, 2 }
   0xa   : > { %177 = sbr.rel (%p2544_p6) target bundleno = 69 (0x45), region = 32 }
   0xf   : > { %180 = sbr.rel (!%p31_p4) target bundleno = 69 (0x45), region = 36  ;;  %s182_s27 = sand.u32 (%p31_p4), 1, %s2957_s19  }
  0x10   : > { %s2716_s28 = sshll.u32 (%p31_p4), %s2961_s20, 3  ;;  %s2720_s29 = smul.u32 (%p31_p4), 800, %s182_s27 }
  0x11   : > { %s3042_s7 = scalar_lea.vmem (%p31_p4), %s3649_s0, %s2716_s28 }
  0x12   : > { %v414_v0 = vld [vmem:[%s3042_s7] sm:$0xff] (%p31_p4)  ;;  %v416_v1 = vld [vmem:[%s3042_s7 + $0x10] sm:$0xff] (%p31_p4)  ;;  %s3050_s8 = scalar_lea.vmem (%p31_p4), [#allocation3], %s2720_s29 }
  0x13   : > { %v418_v2 = vld [vmem:[%s3042_s7 + $0x20] sm:$0xff] (%p31_p4)  ;;  %v420_v3 = vld [vmem:[%s3042_s7 + $0x30] sm:$0xff] (%p31_p4)  ;;  %415 = vst [vmem:[%s3050_s8] sm:$0xff] (%p31_p4), %v414_v0  ;;  %417 = vst [vmem:[%s3050_s8 + $0x8] sm:$0xff] (%p31_p4), %v416_v1 }
  0x14   : > { %v422_v4 = vld [vmem:[%s3042_s7 + $0x40] sm:$0xff]  ;;  %v424_v5 = vld [vmem:[%s3042_s7 + $0x50] sm:$0xff]  ;;  %419 = vst [vmem:[%s3050_s8 + $0x10] sm:$0xff] %v418_v2  ;;  %421 = vst [vmem:[%s3050_s8 + $0x18] sm:$0xff] %v420_v3 }
  0x15   : > { %423 = vst [vmem:[%s3050_s8 + $0x20] sm:$0xff] %v422_v4  ;;  %425 = vst [vmem:[%s3050_s8 + $0x28] sm:$0xff] %v424_v5  ;;  %v426_v6 = vld [vmem:[%s3042_s7 + $0x60] sm:$0xff]  ;;  %v428_v7 = vld [vmem:[%s3042_s7 + $0x70] sm:$0xff] }
  0x16   : > { %v430_v8 = vld [vmem:[%s3042_s7 + $0x80] sm:$0xff]  ;;  %427 = vst [vmem:[%s3050_s8 + $0x30] sm:$0xff] %v426_v6  ;;  %429 = vst [vmem:[%s3050_s8 + $0x38] sm:$0xff] %v428_v7  ;;  %v432_v9 = vld [vmem:[%s3042_s7 + $0x90] sm:$0xff] }
  0x17   : > { %431 = vst [vmem:[%s3050_s8 + $0x40] sm:$0xff] %v430_v8  ;;  %v434_v10 = vld [vmem:[%s3042_s7 + $0xa0] sm:$0xff]  ;;  %v436_v11 = vld [vmem:[%s3042_s7 + $0xb0] sm:$0xff]  ;;  %433 = vst [vmem:[%s3050_s8 + $0x48] sm:$0xff] %v432_v9 }
  0x18   : > { %435 = vst [vmem:[%s3050_s8 + $0x50] sm:$0xff] %v434_v10  ;;  %437 = vst [vmem:[%s3050_s8 + $0x58] sm:$0xff] %v436_v11  ;;  %v438_v12 = vld [vmem:[%s3042_s7 + $0xc0] sm:$0xff]  ;;  %v440_v13 = vld [vmem:[%s3042_s7 + $0xd0] sm:$0xff] }
  0x19   : > { %v442_v14 = vld [vmem:[%s3042_s7 + $0xe0] sm:$0xff]  ;;  %439 = vst [vmem:[%s3050_s8 + $0x60] sm:$0xff] %v438_v12  ;;  %441 = vst [vmem:[%s3050_s8 + $0x68] sm:$0xff] %v440_v13  ;;  %v444_v15 = vld [vmem:[%s3042_s7 + $0xf0] sm:$0xff] }
  0x1a   : > { %443 = vst [vmem:[%s3050_s8 + $0x70] sm:$0xff] %v442_v14  ;;  %v446_v16 = vld [vmem:[%s3042_s7 + $0x100] sm:$0xff]  ;;  %v448_v17 = vld [vmem:[%s3042_s7 + $0x110] sm:$0xff]  ;;  %445 = vst [vmem:[%s3050_s8 + $0x78] sm:$0xff] %v444_v15 }
  0x1b   : > { %447 = vst [vmem:[%s3050_s8 + $0x80] sm:$0xff] %v446_v16  ;;  %449 = vst [vmem:[%s3050_s8 + $0x88] sm:$0xff] %v448_v17  ;;  %v450_v18 = vld [vmem:[%s3042_s7 + $0x120] sm:$0xff]  ;;  %v452_v19 = vld [vmem:[%s3042_s7 + $0x130] sm:$0xff] }
  0x1c   : > { %v454_v20 = vld [vmem:[%s3042_s7 + $0x140] sm:$0xff]  ;;  %451 = vst [vmem:[%s3050_s8 + $0x90] sm:$0xff] %v450_v18  ;;  %453 = vst [vmem:[%s3050_s8 + $0x98] sm:$0xff] %v452_v19  ;;  %v456_v21 = vld [vmem:[%s3042_s7 + $0x150] sm:$0xff] }
  0x1d   : > { %455 = vst [vmem:[%s3050_s8 + $0xa0] sm:$0xff] %v454_v20  ;;  %v458_v22 = vld [vmem:[%s3042_s7 + $0x160] sm:$0xff]  ;;  %v460_v23 = vld [vmem:[%s3042_s7 + $0x170] sm:$0xff]  ;;  %457 = vst [vmem:[%s3050_s8 + $0xa8] sm:$0xff] %v456_v21 }
  0x1e   : > { %459 = vst [vmem:[%s3050_s8 + $0xb0] sm:$0xff] %v458_v22  ;;  %461 = vst [vmem:[%s3050_s8 + $0xb8] sm:$0xff] %v460_v23  ;;  %v462_v24 = vld [vmem:[%s3042_s7 + $0x180] sm:$0xff]  ;;  %v464_v25 = vld [vmem:[%s3042_s7 + $0x190] sm:$0xff] }
  0x1f   : > { %v466_v26 = vld [vmem:[%s3042_s7 + $0x1a0] sm:$0xff]  ;;  %463 = vst [vmem:[%s3050_s8 + $0xc0] sm:$0xff] %v462_v24  ;;  %465 = vst [vmem:[%s3050_s8 + $0xc8] sm:$0xff] %v464_v25  ;;  %v468_v27 = vld [vmem:[%s3042_s7 + $0x1b0] sm:$0xff] }
  0x20   : > { %467 = vst [vmem:[%s3050_s8 + $0xd0] sm:$0xff] %v466_v26  ;;  %v470_v28 = vld [vmem:[%s3042_s7 + $0x1c0] sm:$0xff]  ;;  %v472_v29 = vld [vmem:[%s3042_s7 + $0x1d0] sm:$0xff]  ;;  %469 = vst [vmem:[%s3050_s8 + $0xd8] sm:$0xff] %v468_v27 }
  0x21   : > { %471 = vst [vmem:[%s3050_s8 + $0xe0] sm:$0xff] %v470_v28  ;;  %473 = vst [vmem:[%s3050_s8 + $0xe8] sm:$0xff] %v472_v29  ;;  %v474_v30 = vld [vmem:[%s3042_s7 + $0x1e0] sm:$0xff]  ;;  %v476_v31 = vld [vmem:[%s3042_s7 + $0x1f0] sm:$0xff] }
  0x22   : > { %v478_v32 = vld [vmem:[%s3042_s7 + $0x200] sm:$0xff]  ;;  %475 = vst [vmem:[%s3050_s8 + $0xf0] sm:$0xff] %v474_v30  ;;  %477 = vst [vmem:[%s3050_s8 + $0xf8] sm:$0xff] %v476_v31  ;;  %v480_v33 = vld [vmem:[%s3042_s7 + $0x210] sm:$0xff] }
  0x23   : > { %479 = vst [vmem:[%s3050_s8 + $0x100] sm:$0xff] %v478_v32  ;;  %v482_v34 = vld [vmem:[%s3042_s7 + $0x220] sm:$0xff]  ;;  %v484_v35 = vld [vmem:[%s3042_s7 + $0x230] sm:$0xff]  ;;  %481 = vst [vmem:[%s3050_s8 + $0x108] sm:$0xff] %v480_v33 }
  0x24   : > { %483 = vst [vmem:[%s3050_s8 + $0x110] sm:$0xff] %v482_v34  ;;  %485 = vst [vmem:[%s3050_s8 + $0x118] sm:$0xff] %v484_v35  ;;  %v486_v36 = vld [vmem:[%s3042_s7 + $0x240] sm:$0xff]  ;;  %v488_v37 = vld [vmem:[%s3042_s7 + $0x250] sm:$0xff] }
  0x25   : > { %v490_v38 = vld [vmem:[%s3042_s7 + $0x260] sm:$0xff]  ;;  %487 = vst [vmem:[%s3050_s8 + $0x120] sm:$0xff] %v486_v36  ;;  %489 = vst [vmem:[%s3050_s8 + $0x128] sm:$0xff] %v488_v37  ;;  %v492_v39 = vld [vmem:[%s3042_s7 + $0x270] sm:$0xff] }
  0x26   : > { %491 = vst [vmem:[%s3050_s8 + $0x130] sm:$0xff] %v490_v38  ;;  %v494_v40 = vld [vmem:[%s3042_s7 + $0x280] sm:$0xff]  ;;  %v496_v41 = vld [vmem:[%s3042_s7 + $0x290] sm:$0xff]  ;;  %493 = vst [vmem:[%s3050_s8 + $0x138] sm:$0xff] %v492_v39 }
  0x27   : > { %495 = vst [vmem:[%s3050_s8 + $0x140] sm:$0xff] %v494_v40  ;;  %497 = vst [vmem:[%s3050_s8 + $0x148] sm:$0xff] %v496_v41  ;;  %v498_v42 = vld [vmem:[%s3042_s7 + $0x2a0] sm:$0xff]  ;;  %v500_v43 = vld [vmem:[%s3042_s7 + $0x2b0] sm:$0xff] }
  0x28   : > { %v502_v44 = vld [vmem:[%s3042_s7 + $0x2c0] sm:$0xff]  ;;  %499 = vst [vmem:[%s3050_s8 + $0x150] sm:$0xff] %v498_v42  ;;  %501 = vst [vmem:[%s3050_s8 + $0x158] sm:$0xff] %v500_v43  ;;  %v504_v45 = vld [vmem:[%s3042_s7 + $0x2d0] sm:$0xff] }
  0x29   : > { %503 = vst [vmem:[%s3050_s8 + $0x160] sm:$0xff] %v502_v44  ;;  %v506_v46 = vld [vmem:[%s3042_s7 + $0x2e0] sm:$0xff]  ;;  %v508_v47 = vld [vmem:[%s3042_s7 + $0x2f0] sm:$0xff]  ;;  %505 = vst [vmem:[%s3050_s8 + $0x168] sm:$0xff] %v504_v45 }
  0x2a   : > { %507 = vst [vmem:[%s3050_s8 + $0x170] sm:$0xff] %v506_v46  ;;  %509 = vst [vmem:[%s3050_s8 + $0x178] sm:$0xff] %v508_v47  ;;  %v510_v48 = vld [vmem:[%s3042_s7 + $0x300] sm:$0xff]  ;;  %v512_v49 = vld [vmem:[%s3042_s7 + $0x310] sm:$0xff] }
  0x2b   : > { %v514_v50 = vld [vmem:[%s3042_s7 + $0x320] sm:$0xff]  ;;  %511 = vst [vmem:[%s3050_s8 + $0x180] sm:$0xff] %v510_v48  ;;  %513 = vst [vmem:[%s3050_s8 + $0x188] sm:$0xff] %v512_v49  ;;  %v516_v51 = vld [vmem:[%s3042_s7 + $0x330] sm:$0xff] }
  0x2c   : > { %515 = vst [vmem:[%s3050_s8 + $0x190] sm:$0xff] %v514_v50  ;;  %v518_v52 = vld [vmem:[%s3042_s7 + $0x340] sm:$0xff]  ;;  %v520_v53 = vld [vmem:[%s3042_s7 + $0x350] sm:$0xff]  ;;  %517 = vst [vmem:[%s3050_s8 + $0x198] sm:$0xff] %v516_v51 }
  0x2d   : > { %519 = vst [vmem:[%s3050_s8 + $0x1a0] sm:$0xff] %v518_v52  ;;  %521 = vst [vmem:[%s3050_s8 + $0x1a8] sm:$0xff] %v520_v53  ;;  %v522_v54 = vld [vmem:[%s3042_s7 + $0x360] sm:$0xff]  ;;  %v524_v55 = vld [vmem:[%s3042_s7 + $0x370] sm:$0xff] }
  0x2e   : > { %v526_v56 = vld [vmem:[%s3042_s7 + $0x380] sm:$0xff]  ;;  %523 = vst [vmem:[%s3050_s8 + $0x1b0] sm:$0xff] %v522_v54  ;;  %525 = vst [vmem:[%s3050_s8 + $0x1b8] sm:$0xff] %v524_v55  ;;  %v528_v57 = vld [vmem:[%s3042_s7 + $0x390] sm:$0xff] }
  0x2f   : > { %527 = vst [vmem:[%s3050_s8 + $0x1c0] sm:$0xff] %v526_v56  ;;  %v530_v58 = vld [vmem:[%s3042_s7 + $0x3a0] sm:$0xff]  ;;  %v532_v59 = vld [vmem:[%s3042_s7 + $0x3b0] sm:$0xff]  ;;  %529 = vst [vmem:[%s3050_s8 + $0x1c8] sm:$0xff] %v528_v57 }
  0x30   : > { %531 = vst [vmem:[%s3050_s8 + $0x1d0] sm:$0xff] %v530_v58  ;;  %533 = vst [vmem:[%s3050_s8 + $0x1d8] sm:$0xff] %v532_v59  ;;  %v534_v60 = vld [vmem:[%s3042_s7 + $0x3c0] sm:$0xff]  ;;  %v536_v61 = vld [vmem:[%s3042_s7 + $0x3d0] sm:$0xff] }
  0x31   : > { %v538_v62 = vld [vmem:[%s3042_s7 + $0x3e0] sm:$0xff]  ;;  %535 = vst [vmem:[%s3050_s8 + $0x1e0] sm:$0xff] %v534_v60  ;;  %537 = vst [vmem:[%s3050_s8 + $0x1e8] sm:$0xff] %v536_v61  ;;  %v540_v63 = vld [vmem:[%s3042_s7 + $0x3f0] sm:$0xff] }
  0x32   : > { %539 = vst [vmem:[%s3050_s8 + $0x1f0] sm:$0xff] %v538_v62  ;;  %v542_v0 = vld [vmem:[%s3042_s7 + $0x400] sm:$0xff]  ;;  %v544_v1 = vld [vmem:[%s3042_s7 + $0x410] sm:$0xff]  ;;  %541 = vst [vmem:[%s3050_s8 + $0x1f8] sm:$0xff] %v540_v63 }
  0x33   : > { %543 = vst [vmem:[%s3050_s8 + $0x200] sm:$0xff] %v542_v0  ;;  %545 = vst [vmem:[%s3050_s8 + $0x208] sm:$0xff] %v544_v1  ;;  %v546_v2 = vld [vmem:[%s3042_s7 + $0x420] sm:$0xff]  ;;  %v548_v3 = vld [vmem:[%s3042_s7 + $0x430] sm:$0xff] }
  0x34   : > { %v550_v4 = vld [vmem:[%s3042_s7 + $0x440] sm:$0xff]  ;;  %547 = vst [vmem:[%s3050_s8 + $0x210] sm:$0xff] %v546_v2  ;;  %549 = vst [vmem:[%s3050_s8 + $0x218] sm:$0xff] %v548_v3  ;;  %v552_v5 = vld [vmem:[%s3042_s7 + $0x450] sm:$0xff] }
  0x35   : > { %551 = vst [vmem:[%s3050_s8 + $0x220] sm:$0xff] %v550_v4  ;;  %v554_v6 = vld [vmem:[%s3042_s7 + $0x460] sm:$0xff]  ;;  %v556_v7 = vld [vmem:[%s3042_s7 + $0x470] sm:$0xff]  ;;  %553 = vst [vmem:[%s3050_s8 + $0x228] sm:$0xff] %v552_v5 }
  0x36   : > { %555 = vst [vmem:[%s3050_s8 + $0x230] sm:$0xff] %v554_v6  ;;  %557 = vst [vmem:[%s3050_s8 + $0x238] sm:$0xff] %v556_v7  ;;  %v558_v8 = vld [vmem:[%s3042_s7 + $0x480] sm:$0xff]  ;;  %v560_v9 = vld [vmem:[%s3042_s7 + $0x490] sm:$0xff] }
  0x37   : > { %v562_v10 = vld [vmem:[%s3042_s7 + $0x4a0] sm:$0xff]  ;;  %559 = vst [vmem:[%s3050_s8 + $0x240] sm:$0xff] %v558_v8  ;;  %561 = vst [vmem:[%s3050_s8 + $0x248] sm:$0xff] %v560_v9  ;;  %v564_v11 = vld [vmem:[%s3042_s7 + $0x4b0] sm:$0xff] }
  0x38   : > { %563 = vst [vmem:[%s3050_s8 + $0x250] sm:$0xff] %v562_v10  ;;  %v566_v12 = vld [vmem:[%s3042_s7 + $0x4c0] sm:$0xff]  ;;  %v568_v13 = vld [vmem:[%s3042_s7 + $0x4d0] sm:$0xff]  ;;  %565 = vst [vmem:[%s3050_s8 + $0x258] sm:$0xff] %v564_v11 }
  0x39   : > { %567 = vst [vmem:[%s3050_s8 + $0x260] sm:$0xff] %v566_v12  ;;  %569 = vst [vmem:[%s3050_s8 + $0x268] sm:$0xff] %v568_v13  ;;  %v570_v14 = vld [vmem:[%s3042_s7 + $0x4e0] sm:$0xff]  ;;  %v572_v15 = vld [vmem:[%s3042_s7 + $0x4f0] sm:$0xff] }
  0x3a   : > { %v574_v16 = vld [vmem:[%s3042_s7 + $0x500] sm:$0xff]  ;;  %571 = vst [vmem:[%s3050_s8 + $0x270] sm:$0xff] %v570_v14  ;;  %573 = vst [vmem:[%s3050_s8 + $0x278] sm:$0xff] %v572_v15  ;;  %v576_v17 = vld [vmem:[%s3042_s7 + $0x510] sm:$0xff] }
  0x3b   : > { %575 = vst [vmem:[%s3050_s8 + $0x280] sm:$0xff] %v574_v16  ;;  %v578_v18 = vld [vmem:[%s3042_s7 + $0x520] sm:$0xff]  ;;  %v580_v19 = vld [vmem:[%s3042_s7 + $0x530] sm:$0xff]  ;;  %577 = vst [vmem:[%s3050_s8 + $0x288] sm:$0xff] %v576_v17 }
  0x3c   : > { %579 = vst [vmem:[%s3050_s8 + $0x290] sm:$0xff] %v578_v18  ;;  %581 = vst [vmem:[%s3050_s8 + $0x298] sm:$0xff] %v580_v19  ;;  %v582_v20 = vld [vmem:[%s3042_s7 + $0x540] sm:$0xff]  ;;  %v584_v21 = vld [vmem:[%s3042_s7 + $0x550] sm:$0xff] }
  0x3d   : > { %v586_v22 = vld [vmem:[%s3042_s7 + $0x560] sm:$0xff]  ;;  %583 = vst [vmem:[%s3050_s8 + $0x2a0] sm:$0xff] %v582_v20  ;;  %585 = vst [vmem:[%s3050_s8 + $0x2a8] sm:$0xff] %v584_v21  ;;  %v588_v23 = vld [vmem:[%s3042_s7 + $0x570] sm:$0xff] }
  0x3e   : > { %587 = vst [vmem:[%s3050_s8 + $0x2b0] sm:$0xff] %v586_v22  ;;  %v590_v24 = vld [vmem:[%s3042_s7 + $0x580] sm:$0xff]  ;;  %v592_v25 = vld [vmem:[%s3042_s7 + $0x590] sm:$0xff]  ;;  %589 = vst [vmem:[%s3050_s8 + $0x2b8] sm:$0xff] %v588_v23 }
  0x3f   : > { %591 = vst [vmem:[%s3050_s8 + $0x2c0] sm:$0xff] %v590_v24  ;;  %593 = vst [vmem:[%s3050_s8 + $0x2c8] sm:$0xff] %v592_v25  ;;  %v594_v26 = vld [vmem:[%s3042_s7 + $0x5a0] sm:$0xff]  ;;  %v596_v27 = vld [vmem:[%s3042_s7 + $0x5b0] sm:$0xff] }
  0x40   : > { %v598_v28 = vld [vmem:[%s3042_s7 + $0x5c0] sm:$0xff]  ;;  %595 = vst [vmem:[%s3050_s8 + $0x2d0] sm:$0xff] %v594_v26  ;;  %597 = vst [vmem:[%s3050_s8 + $0x2d8] sm:$0xff] %v596_v27  ;;  %v600_v29 = vld [vmem:[%s3042_s7 + $0x5d0] sm:$0xff] }
  0x41   : > { %599 = vst [vmem:[%s3050_s8 + $0x2e0] sm:$0xff] %v598_v28  ;;  %v602_v30 = vld [vmem:[%s3042_s7 + $0x5e0] sm:$0xff]  ;;  %v604_v31 = vld [vmem:[%s3042_s7 + $0x5f0] sm:$0xff]  ;;  %601 = vst [vmem:[%s3050_s8 + $0x2e8] sm:$0xff] %v600_v29 }
  0x42   : > { %603 = vst [vmem:[%s3050_s8 + $0x2f0] sm:$0xff] %v602_v30  ;;  %605 = vst [vmem:[%s3050_s8 + $0x2f8] sm:$0xff] %v604_v31  ;;  %v606_v32 = vld [vmem:[%s3042_s7 + $0x600] sm:$0xff]  ;;  %v608_v33 = vld [vmem:[%s3042_s7 + $0x610] sm:$0xff] }
  0x43   : > { %v610_v34 = vld [vmem:[%s3042_s7 + $0x620] sm:$0xff]  ;;  %607 = vst [vmem:[%s3050_s8 + $0x300] sm:$0xff] %v606_v32  ;;  %609 = vst [vmem:[%s3050_s8 + $0x308] sm:$0xff] %v608_v33  ;;  %v612_v35 = vld [vmem:[%s3042_s7 + $0x630] sm:$0xff] }
  0x44   : > { %611 = vst [vmem:[%s3050_s8 + $0x310] sm:$0xff] %v610_v34  ;;  %613 = vst [vmem:[%s3050_s8 + $0x318] sm:$0xff] %v612_v35 }
  0x45 PF: > { %p2547_p7 = scmp.ge.s32.totalorder %s2961_s20, 1  ;;  %p618_p8 = scmp.lt.s32.totalorder %s2961_s20, 3 }
  0x47   : > { %p619_p9 = pnand %p2547_p7, %p618_p8 }
  0x48   : > { %s625_s9 = sand.u32 (!%p619_p9), 1, %s2953_s18   ;;  %s2964_s23 = smov (!%p619_p9), 111  }
  0x49   : > { %622 = sbr.rel (%p619_p9) target bundleno = 812 (0x32c), region = 74  ;;  %s2965_s24 = smov (!%p619_p9), 113  }
  0x4a   : > { %s2721_s10 = smul.u32 (!%p619_p9), 800, %s625_s9  ;;  %s2966_s29 = smov (!%p619_p9), 127  }
  0x4b   : > { %s2967_s30 = smov (!%p619_p9), 1   ;;  %s2968_s6 = smov (!%p619_p9), 15  }
  0x4c   : > { %s3263_s15 = scalar_lea.vmem (!%p619_p9), [#allocation3], %s2721_s10  ;;  %s2969_s7 = smov (!%p619_p9), 17  }
  0x4d   : > { %s2971_s27 = smov (!%p619_p9), 112   ;;  %s2548_s11 = sshll.u32 (!%p619_p9), %s625_s9, 5 }
  0x4e   : > { %v2854_v36 = vld [vmem:[%s3650_s1 + $0x4] ss:$28 sps:$4 sm:$0xff]   ;;  %v2963_v37 = vmov 0   ;;  %v2861_v38 = vld [vmem:[%s3650_s1 + $0xc] ss:$28 sps:$4 sm:$0xff]   ;;  %v1623_v30 = vlaneseq  ;;  %vm1366_vm6 = vcmask 261120  }
  0x4f   : > { %1605 = vst [vmem:[#allocation2] sm:$0xff] %v2963_v37  ;;  %1606 = vst [vmem:[#allocation2 + $0x8] sm:$0xff] %v2963_v37  ;;  %2755 = vset.pattern.permute.xlu0 %v2963_v37  ;;  %2756 = vset.pattern.permute.xlu1 %v2963_v37  ;;  %v2757_v39 = vld [vmem:[%s3263_s15 + $0x74] ss:$8 sps:$4 sm:$0xff]   ;;  %v2759_v40 = vld [vmem:[%s3263_s15 + $0x70] ss:$8 sps:$4 sm:$0xff]  }
  0x50   : > { %1607 = vst [vmem:[#allocation2 + $0x10] sm:$0xff] %v2963_v37  ;;  %1608 = vst [vmem:[#allocation2 + $0x18] sm:$0xff] %v2963_v37  ;;  %1405 = vmatprep.mubr.bf16.mxu0 %v2854_v36  ;;  %1458 = vmatprep.mubr.bf16.mxu1 %v2861_v38  ;;  %v2760_v41 = vld [vmem:[%s3263_s15 + $0x174] ss:$8 sps:$4 sm:$0xff]   ;;  %v2762_v42 = vld [vmem:[%s3263_s15 + $0x170] ss:$8 sps:$4 sm:$0xff]  }
  0x51   : > { %1373 = vmatprep.subr.bf16.mxu0 %v2757_v39  ;;  %v2763_v43 = vld [vmem:[%s3263_s15 + $0x64] ss:$8 sps:$4 sm:$0xff]   ;;  %v2765_v44 = vld [vmem:[%s3263_s15 + $0x60] ss:$8 sps:$4 sm:$0xff]   ;;  %1426 = vmatprep.subr.bf16.mxu1 %v2760_v41  ;;  %v2769_v47 = vld [vmem:[%s3263_s15 + $0x54] ss:$8 sps:$4 sm:$0xff]  }
  0x52   : > { %1374 = vmatpush1.bf16.msra.mxu0 %v2759_v40  ;;  %v2766_v45 = vld [vmem:[%s3263_s15 + $0x164] ss:$8 sps:$4 sm:$0xff]   ;;  %1427 = vmatpush1.bf16.msra.mxu1 %v2762_v42  ;;  %v2768_v46 = vld [vmem:[%s3263_s15 + $0x160] ss:$8 sps:$4 sm:$0xff]   ;;  %v2771_v48 = vld [vmem:[%s3263_s15 + $0x50] ss:$8 sps:$4 sm:$0xff]  }
  0x53   : > { %1375 = vmatprep.subr.bf16.mxu0 %v2763_v43  ;;  %1428 = vmatprep.subr.bf16.mxu1 %v2766_v45  ;;  %v2772_v49 = vld [vmem:[%s3263_s15 + $0x154] ss:$8 sps:$4 sm:$0xff]   ;;  %v2775_v50 = vld [vmem:[%s3263_s15 + $0x44] ss:$8 sps:$4 sm:$0xff]   ;;  %v2774_v51 = vld [vmem:[%s3263_s15 + $0x150] ss:$8 sps:$4 sm:$0xff]  }
  0x54   : > { %v2778_v52 = vld [vmem:[%s3263_s15 + $0x144] ss:$8 sps:$4 sm:$0xff]   ;;  %v2777_v53 = vld [vmem:[%s3263_s15 + $0x40] ss:$8 sps:$4 sm:$0xff]   ;;  %v2781_v54 = vld [vmem:[%s3263_s15 + $0x34] ss:$8 sps:$4 sm:$0xff]  }
  0x55   : > { %v2780_v55 = vld [vmem:[%s3263_s15 + $0x140] ss:$8 sps:$4 sm:$0xff]   ;;  %v2784_v56 = vld [vmem:[%s3263_s15 + $0x134] ss:$8 sps:$4 sm:$0xff]   ;;  %v2783_v57 = vld [vmem:[%s3263_s15 + $0x30] ss:$8 sps:$4 sm:$0xff]  }
  0x56   : > { %1376 = vmatpush1.bf16.msra.mxu0 %v2765_v44  ;;  %1429 = vmatpush1.bf16.msra.mxu1 %v2768_v46  ;;  %v2787_v58 = vld [vmem:[%s3263_s15 + $0x24] ss:$8 sps:$4 sm:$0xff]   ;;  %v2786_v59 = vld [vmem:[%s3263_s15 + $0x130] ss:$8 sps:$4 sm:$0xff]   ;;  %v2789_v61 = vld [vmem:[%s3263_s15 + $0x20] ss:$8 sps:$4 sm:$0xff]  }
  0x57   : > { %1377 = vmatprep.subr.bf16.mxu0 %v2769_v47  ;;  %1430 = vmatprep.subr.bf16.mxu1 %v2772_v49  ;;  %v2790_v60 = vld [vmem:[%s3263_s15 + $0x124] ss:$8 sps:$4 sm:$0xff]   ;;  %v2793_v62 = vld [vmem:[%s3263_s15 + $0x14] ss:$8 sps:$4 sm:$0xff]   ;;  %v2792_v63 = vld [vmem:[%s3263_s15 + $0x120] ss:$8 sps:$4 sm:$0xff]  }
  0x58   : > { %v2796_v0 = vld [vmem:[%s3263_s15 + $0x114] ss:$8 sps:$4 sm:$0xff]   ;;  %v2795_v1 = vld [vmem:[%s3263_s15 + $0x10] ss:$8 sps:$4 sm:$0xff]   ;;  %v2799_v2 = vld [vmem:[%s3263_s15 + $0x4] ss:$8 sps:$4 sm:$0xff]  }
  0x59   : > { %v2798_v3 = vld [vmem:[%s3263_s15 + $0x110] ss:$8 sps:$4 sm:$0xff]   ;;  %v2802_v4 = vld [vmem:[%s3263_s15 + $0x104] ss:$8 sps:$4 sm:$0xff]   ;;  %v2801_v5 = vld [vmem:[%s3263_s15] ss:$8 sps:$4 sm:$0xff]  }
  0x5a   : > { %1378 = vmatpush1.bf16.msra.mxu0 %v2771_v48  ;;  %1431 = vmatpush1.bf16.msra.mxu1 %v2774_v51  ;;  %v2805_v6 = vld [vmem:[%s3263_s15 + $0xf4] ss:$8 sps:$4 sm:$0xff]   ;;  %v2804_v7 = vld [vmem:[%s3263_s15 + $0x100] ss:$8 sps:$4 sm:$0xff]   ;;  %v2807_v9 = vld [vmem:[%s3263_s15 + $0xf0] ss:$8 sps:$4 sm:$0xff]  }
  0x5b   : > { %1379 = vmatprep.subr.bf16.mxu0 %v2775_v50  ;;  %1432 = vmatprep.subr.bf16.mxu1 %v2778_v52  ;;  %v2808_v8 = vld [vmem:[%s3263_s15 + $0x1f4] ss:$8 sps:$4 sm:$0xff]   ;;  %v2811_v10 = vld [vmem:[%s3263_s15 + $0xe4] ss:$8 sps:$4 sm:$0xff]   ;;  %v2810_v11 = vld [vmem:[%s3263_s15 + $0x1f0] ss:$8 sps:$4 sm:$0xff]  }
  0x5c   : > { %v2814_v12 = vld [vmem:[%s3263_s15 + $0x1e4] ss:$8 sps:$4 sm:$0xff]   ;;  %v2813_v13 = vld [vmem:[%s3263_s15 + $0xe0] ss:$8 sps:$4 sm:$0xff]   ;;  %v2817_v14 = vld [vmem:[%s3263_s15 + $0xd4] ss:$8 sps:$4 sm:$0xff]  }
  0x5d   : > { %v2816_v15 = vld [vmem:[%s3263_s15 + $0x1e0] ss:$8 sps:$4 sm:$0xff]   ;;  %v2820_v16 = vld [vmem:[%s3263_s15 + $0x1d4] ss:$8 sps:$4 sm:$0xff]   ;;  %v2819_v17 = vld [vmem:[%s3263_s15 + $0xd0] ss:$8 sps:$4 sm:$0xff]  }
  0x5e   : > { %1380 = vmatpush1.bf16.msra.mxu0 %v2777_v53  ;;  %1433 = vmatpush1.bf16.msra.mxu1 %v2780_v55  ;;  %v2823_v18 = vld [vmem:[%s3263_s15 + $0xc4] ss:$8 sps:$4 sm:$0xff]   ;;  %v2822_v19 = vld [vmem:[%s3263_s15 + $0x1d0] ss:$8 sps:$4 sm:$0xff]   ;;  %v2825_v21 = vld [vmem:[%s3263_s15 + $0xc0] ss:$8 sps:$4 sm:$0xff]  }
  0x5f   : > { %1381 = vmatprep.subr.bf16.mxu0 %v2781_v54  ;;  %1434 = vmatprep.subr.bf16.mxu1 %v2784_v56  ;;  %v2826_v20 = vld [vmem:[%s3263_s15 + $0x1c4] ss:$8 sps:$4 sm:$0xff]   ;;  %v2829_v22 = vld [vmem:[%s3263_s15 + $0xb4] ss:$8 sps:$4 sm:$0xff]   ;;  %v2828_v23 = vld [vmem:[%s3263_s15 + $0x1c0] ss:$8 sps:$4 sm:$0xff]  }
  0x60   : > { %v2832_v24 = vld [vmem:[%s3263_s15 + $0x1b4] ss:$8 sps:$4 sm:$0xff]   ;;  %v2831_v25 = vld [vmem:[%s3263_s15 + $0xb0] ss:$8 sps:$4 sm:$0xff]   ;;  %v2835_v26 = vld [vmem:[%s3263_s15 + $0xa4] ss:$8 sps:$4 sm:$0xff]  }
  0x61   : > { %v2834_v27 = vld [vmem:[%s3263_s15 + $0x1b0] ss:$8 sps:$4 sm:$0xff]   ;;  %v2838_v28 = vld [vmem:[%s3263_s15 + $0x1a4] ss:$8 sps:$4 sm:$0xff]   ;;  %v2837_v29 = vld [vmem:[%s3263_s15 + $0xa0] ss:$8 sps:$4 sm:$0xff]  }
  0x62   : > { %1382 = vmatpush1.bf16.msra.mxu0 %v2783_v57  ;;  %1435 = vmatpush1.bf16.msra.mxu1 %v2786_v59  ;;  %v2841_v31 = vld [vmem:[%s3263_s15 + $0x94] ss:$8 sps:$4 sm:$0xff]   ;;  %v2840_v32 = vld [vmem:[%s3263_s15 + $0x1a0] ss:$8 sps:$4 sm:$0xff]   ;;  %v2843_v34 = vld [vmem:[%s3263_s15 + $0x90] ss:$8 sps:$4 sm:$0xff]  }
  0x63   : > { %1383 = vmatprep.subr.bf16.mxu0 %v2787_v58  ;;  %1436 = vmatprep.subr.bf16.mxu1 %v2790_v60  ;;  %v2844_v33 = vld [vmem:[%s3263_s15 + $0x194] ss:$8 sps:$4 sm:$0xff]   ;;  %v1624_v35 = vand.u32 127, %v1623_v30  ;;  %v2847_v36 = vld [vmem:[%s3263_s15 + $0x84] ss:$8 sps:$4 sm:$0xff]   ;;  %vm1663_vm7 = vcmask 908288  }
  0x64   : > { %v2846_v38 = vld [vmem:[%s3263_s15 + $0x190] ss:$8 sps:$4 sm:$0xff]   ;;  %v2850_v39 = vld [vmem:[%s3263_s15 + $0x184] ss:$8 sps:$4 sm:$0xff]   ;;  %v2849_v40 = vld [vmem:[%s3263_s15 + $0x80] ss:$8 sps:$4 sm:$0xff]  }
  0x65   : > { %v1625_v41 = vadd.s32 128, %v1624_v35  ;;  %v2852_v42 = vld [vmem:[%s3650_s1] ss:$28 sps:$4 sm:$0xff]   ;;  %v2856_v45 = vld [vmem:[%s3263_s15 + $0x270] ss:$8 sps:$4 sm:$0xff]   ;;  %v1630_v48 = vand.u32 15, %v1624_v35 }
  0x66   : > { %1384 = vmatpush1.bf16.msra.mxu0 %v2789_v61  ;;  %1437 = vmatpush1.bf16.msra.mxu1 %v2792_v63  ;;  %v2858_v43 = vld [vmem:[%s3263_s15 + $0x274] ss:$8 sps:$4 sm:$0xff]   ;;  %v2855_v44 = vld [vmem:[%s3263_s15 + $0x180] ss:$8 sps:$4 sm:$0xff]   ;;  %v2864_v49 = vld [vmem:[%s3263_s15 + $0x264] ss:$8 sps:$4 sm:$0xff]  }
  0x67   : > { %1385 = vmatprep.subr.bf16.mxu0 %v2793_v62  ;;  %1438 = vmatprep.subr.bf16.mxu1 %v2796_v0  ;;  %v2859_v46 = vld [vmem:[%s3650_s1 + $0x8] ss:$28 sps:$4 sm:$0xff]   ;;  %v2898_v47 = vld [vmem:[%s3650_s1 + $0x3c] ss:$28 sps:$4 sm:$0xff]   ;;  %v1637_v51 = vand.u32 15, %v1625_v41  ;;  %vm3348_vm0 = vcmp.gt.s32.totalorder %v1630_v48, 0 }
  0x68   : > { %v2909_v50 = vld [vmem:[%s3263_s15 + $0x314] ss:$8 sps:$4 sm:$0xff]   ;;  %v2901_v52 = vld [vmem:[%s3650_s1 + $0x44] ss:$28 sps:$4 sm:$0xff]   ;;  %v2907_v53 = vld [vmem:[%s3263_s15 + $0x310] ss:$8 sps:$4 sm:$0xff]  }
  0x69   : > { %v2915_v54 = vld [vmem:[%s3263_s15 + $0x304] ss:$8 sps:$4 sm:$0xff]   ;;  %v2862_v55 = vld [vmem:[%s3263_s15 + $0x260] ss:$8 sps:$4 sm:$0xff]   ;;  %vm3352_vm1 = vcmp.gt.s32.totalorder %v1637_v51, 0  ;;  %vm3362_vm2 = vcmp.lt.s32.totalorder %v1630_v48, 15 }
  0x6a   : > { %1386 = vmatpush1.bf16.msra.mxu0 %v2795_v1  ;;  %1439 = vmatpush1.bf16.msra.mxu1 %v2798_v3  ;;  %v2867_v58 = vld [vmem:[%s3263_s15 + $0x254] ss:$8 sps:$4 sm:$0xff]   ;;  %v2865_v60 = vld [vmem:[%s3263_s15 + $0x250] ss:$8 sps:$4 sm:$0xff]   ;;  %v2913_v61 = vld [vmem:[%s3263_s15 + $0x300] ss:$8 sps:$4 sm:$0xff]  }
  0x6b   : > { %1387 = vmatprep.subr.bf16.mxu0 %v2799_v2  ;;  %1440 = vmatprep.subr.bf16.mxu1 %v2802_v4  ;;  %v2900_v59 = vld [vmem:[%s3650_s1 + $0x38] ss:$28 sps:$4 sm:$0xff]   ;;  %vm3366_vm3 = vcmp.lt.s32.totalorder %v1637_v51, 15  ;;  %v2870_v0 = vld [vmem:[%s3263_s15 + $0x244] ss:$8 sps:$4 sm:$0xff]   ;;  %vm1658_vm4 = vmpackc.low %vm3352_vm1, %vm3348_vm0  ;;  %vm1839_vm10 = vcmask 924672  }
  0x6c   : > { %v2903_v1 = vld [vmem:[%s3650_s1 + $0x40] ss:$28 sps:$4 sm:$0xff]   ;;  %v2922_v2 = vld [vmem:[%s3650_s1 + $0x14] ss:$28 sps:$4 sm:$0xff]   ;;  %v1659_v4 = vsel %vm1658_vm4, 65537, %v2963_v37  ;;  %vm1834_vm5 = vmpackc.low %vm3366_vm3, %vm3362_vm2  ;;  %vm1931_vm11 = vcmask 1039360  }
  0x6d   : > { %v772_v3 = vld [vmem:[%s3651_s2] sm:$0xff]  ;;  %1660 = vrot.lane.b32.xlu1 %v1659_v4, %s2964_s23  ;;  %v2910_v30 = vld [vmem:[%s3263_s15 + $0x290] ss:$8 sps:$4 sm:$0xff]   ;;  %vm1965_vm2 = vcmask 7168   ;;  %vm1873_vm3 = vcmask 121856   ;;  %s650_s12 = scalar_lea.vmem [#allocation4], %s2548_s11 }
  0x6e   : > { %1388 = vmatpush1.bf16.msra.mxu0 %v2801_v5  ;;  %1441 = vmatpush1.bf16.msra.mxu1 %v2804_v7  ;;  %v2868_v5 = vld [vmem:[%s3263_s15 + $0x240] ss:$8 sps:$4 sm:$0xff]   ;;  %v1835_v7 = vsel %vm1834_vm5, 65537, %v2963_v37  ;;  %s2719_s18 = sshll.u32 (%p3032_p5), %s2541_s21, 4 }
  0x6f   : > { %1389 = vmatprep.subr.bf16.mxu0 %v2805_v6  ;;  %1442 = vmatprep.subr.bf16.mxu1 %v2808_v8  ;;  %v773_v6 = vld [vmem:[%s3651_s2 + $0x8] sm:$0xff]  ;;  %v2873_v8 = vld [vmem:[%s3263_s15 + $0x234] ss:$8 sps:$4 sm:$0xff]   ;;  %s2461_s14 = scalar_lea.vmem (%p3032_p5), %s3654_s5, %s2719_s18 }
  0x70   : > { %778 = vperm.xlu0 %2755, %v772_v3   ;;  %v2925_v35 = vld [vmem:[%s3650_s1 + $0x48] ss:$28 sps:$4 sm:$0xff]  }
  0x71   : > { %1836 = vrot.lane.b32.xlu1 %v1835_v7, %s2965_s24 }
  0x72   : > { %1390 = vmatpush2.bf16.msra.mxu0 %v2807_v9  ;;  %1443 = vmatpush2.bf16.msra.mxu1 %v2810_v11  ;;  %v2871_v9 = vld [vmem:[%s3263_s15 + $0x230] ss:$8 sps:$4 sm:$0xff]  }
  0x73   : > { %1391 = vmatprep.subr.bf16.mxu0 %v2811_v10  ;;  %1444 = vmatprep.subr.bf16.mxu1 %v2814_v12  ;;  %v2876_v10 = vld [vmem:[%s3263_s15 + $0x224] ss:$8 sps:$4 sm:$0xff]   ;;  %v2919_v11 = vld [vmem:[%s3650_s1 + $0x18] ss:$28 sps:$4 sm:$0xff]   ;;  %v2874_v12 = vld [vmem:[%s3263_s15 + $0x220] ss:$8 sps:$4 sm:$0xff]  }
  0x74   : > { %783 = vperm.xlu0 %2755, %v773_v6  }
  0x75   : > { %2093 = vrot.lane.b32.xlu1 %v1835_v7, %s2967_s30 }
  0x76   : > { %1392 = vmatpush2.bf16.msra.mxu0 %v2813_v13  ;;  %1445 = vmatpush2.bf16.msra.mxu1 %v2816_v15  ;;  %v2879_v13 = vld [vmem:[%s3263_s15 + $0x214] ss:$8 sps:$4 sm:$0xff]   ;;  %v2882_v15 = vld [vmem:[%s3263_s15 + $0x204] ss:$8 sps:$4 sm:$0xff]  }
  0x77   : > { %1393 = vmatprep.subr.bf16.mxu0 %v2817_v14  ;;  %1446 = vmatprep.subr.bf16.mxu1 %v2820_v16  ;;  %v2877_v14 = vld [vmem:[%s3263_s15 + $0x210] ss:$8 sps:$4 sm:$0xff]   ;;  %v2880_v16 = vld [vmem:[%s3263_s15 + $0x200] ss:$8 sps:$4 sm:$0xff]  }
  0x78   : > { %1928 = vrot.lane.b32.xlu0 %v1659_v4, %s2966_s29 }
  0x79   : > { %2354 = vrot.lane.b32.xlu1 %v1835_v7, %s2969_s7 }
  0x7a   : > { %1394 = vmatpush2.bf16.msra.mxu0 %v2819_v17  ;;  %1447 = vmatpush2.bf16.msra.mxu1 %v2822_v19  ;;  %v2885_v17 = vld [vmem:[%s3263_s15 + $0x2f4] ss:$8 sps:$4 sm:$0xff]   ;;  %v2888_v19 = vld [vmem:[%s3263_s15 + $0x2e4] ss:$8 sps:$4 sm:$0xff]  }
  0x7b   : > { %1395 = vmatprep.subr.bf16.mxu0 %v2823_v18  ;;  %1448 = vmatprep.subr.bf16.mxu1 %v2826_v20  ;;  %v2883_v18 = vld [vmem:[%s3263_s15 + $0x2f0] ss:$8 sps:$4 sm:$0xff]   ;;  %v2886_v20 = vld [vmem:[%s3263_s15 + $0x2e0] ss:$8 sps:$4 sm:$0xff]  }
  0x7c   : > { %2183 = vrot.lane.b32.xlu0 %v1659_v4, %s2968_s6 }
  0x7e   : > { %1396 = vmatpush2.bf16.msra.mxu0 %v2825_v21  ;;  %1449 = vmatpush2.bf16.msra.mxu1 %v2828_v23  ;;  %v2891_v21 = vld [vmem:[%s3263_s15 + $0x2d4] ss:$8 sps:$4 sm:$0xff]   ;;  %v2894_v23 = vld [vmem:[%s3263_s15 + $0x2c4] ss:$8 sps:$4 sm:$0xff]  }
  0x7f   : > { %1397 = vmatprep.subr.bf16.mxu0 %v2829_v22  ;;  %1450 = vmatprep.subr.bf16.mxu1 %v2832_v24  ;;  %v2889_v22 = vld [vmem:[%s3263_s15 + $0x2d0] ss:$8 sps:$4 sm:$0xff]   ;;  %v2892_v24 = vld [vmem:[%s3263_s15 + $0x2c0] ss:$8 sps:$4 sm:$0xff]  }
  0x82   : > { %1398 = vmatpush2.bf16.msra.mxu0 %v2831_v25  ;;  %1451 = vmatpush2.bf16.msra.mxu1 %v2834_v27  ;;  %v2897_v25 = vld [vmem:[%s3263_s15 + $0x2b4] ss:$8 sps:$4 sm:$0xff]   ;;  %v2906_v27 = vld [vmem:[%s3263_s15 + $0x2a4] ss:$8 sps:$4 sm:$0xff]  }
  0x83   : > { %1399 = vmatprep.subr.bf16.mxu0 %v2835_v26  ;;  %1452 = vmatprep.subr.bf16.mxu1 %v2838_v28  ;;  %v2895_v26 = vld [vmem:[%s3263_s15 + $0x2b0] ss:$8 sps:$4 sm:$0xff]   ;;  %v2904_v28 = vld [vmem:[%s3263_s15 + $0x2a0] ss:$8 sps:$4 sm:$0xff]  }
  0x86   : > { %1400 = vmatpush2.bf16.msra.mxu0 %v2837_v29  ;;  %1453 = vmatpush2.bf16.msra.mxu1 %v2840_v32  ;;  %v2912_v29 = vld [vmem:[%s3263_s15 + $0x294] ss:$8 sps:$4 sm:$0xff]   ;;  %v2916_v32 = vld [vmem:[%s3263_s15 + $0x280] ss:$8 sps:$4 sm:$0xff]  }
  0x87   : > { %1401 = vmatprep.subr.bf16.mxu0 %v2841_v31  ;;  %1454 = vmatprep.subr.bf16.mxu1 %v2844_v33  ;;  %v2918_v31 = vld [vmem:[%s3263_s15 + $0x284] ss:$8 sps:$4 sm:$0xff]   ;;  %s2970_s15 = smov 16  }
  0x88   : > { %v2920_v33 = vld [vmem:[%s3650_s1 + $0x10] ss:$28 sps:$4 sm:$0xff]  }
  0x8a   : > { %1402 = vmatpush2.bf16.msra.mxu0 %v2843_v34  ;;  %1455 = vmatpush2.bf16.msra.mxu1 %v2846_v38  ;;  %v2923_v34 = vld [vmem:[%s3650_s1 + $0x4c] ss:$28 sps:$4 sm:$0xff]  }
  0x8b   : > { %1403 = vmatprep.subr.bf16.mxu0 %v2847_v36  ;;  %1456 = vmatprep.subr.bf16.mxu1 %v2850_v39  ;;  %v2926_v36 = vld [vmem:[%s3650_s1 + $0x50] ss:$28 sps:$4 sm:$0xff]  }
  0x8e   : > { %1404 = vmatpush2.bf16.msra.mxu0 %v2849_v40  ;;  %1457 = vmatpush2.bf16.msra.mxu1 %v2855_v44 }
  0x8f   : > { %1479 = vmatprep.subr.bf16.mxu0 %v2858_v43  ;;  %1544 = vmatprep.subr.bf16.mxu1 %v2909_v50 }
  0x91   : > { %1406 = vmatmul.mubr.bf16.vlgmr.msra.gmra.mxu0 %v2852_v42  ;;  %1459 = vmatmul.mubr.bf16.vlgmr.msra.gmra.mxu1 %v2859_v46 }
  0x92   : > { %1480 = vmatpush1.bf16.msra.mxu0 %v2856_v45  ;;  %1415 = vmatprep.mubr.bf16.mxu0 %v2898_v47 }
  0x93   : > { %1481 = vmatprep.subr.bf16.mxu0 %v2864_v49  ;;  %1468 = vmatprep.mubr.bf16.mxu1 %v2901_v52 }
  0x94   : > { %1545 = vmatpush1.bf16.msra.mxu1 %v2907_v53 }
  0x95   : > { %1546 = vmatprep.subr.bf16.mxu1 %v2915_v54 }
  0x96   : > { %1482 = vmatpush1.bf16.msra.mxu0 %v2862_v55 }
  0x97   : > { %1483 = vmatprep.subr.bf16.mxu0 %v2867_v58 }
  0x98   : > { %1547 = vmatpush1.bf16.msra.mxu1 %v2913_v61 }
  0x99   : > { %1416 = vmatmul.mubr.bf16.gmra.mxu0 %v2900_v59  ;;  %1469 = vmatmul.mubr.bf16.gmra.mxu1 %v2903_v1 }
  0x9a   : > { %1484 = vmatpush1.bf16.msra.mxu0 %v2865_v60  ;;  %1511 = vmatprep.mubr.bf16.mxu0 %v2922_v2 }
  0x9b   : > { %1485 = vmatprep.subr.bf16.mxu0 %v2870_v0  ;;  %1564 = vmatprep.mubr.bf16.mxu1 %v2963_v37 }
  0x9e   : > { %1486 = vmatpush1.bf16.msra.mxu0 %v2868_v5 }
  0x9f   : > { %1487 = vmatprep.subr.bf16.mxu0 %v2873_v8 }
  0xa1   : > { %2663 = vmatmul.mubr.msk.bf16.vlgmr.msra.gmra.mxu1 %vm1366_vm6, %v2919_v11 }
  0xa2   : > { %1488 = vmatpush1.bf16.msra.mxu0 %v2871_v9  ;;  %1574 = vmatprep.mubr.bf16.mxu1 %v2963_v37 }
  0xa3   : > { %1489 = vmatprep.subr.bf16.mxu0 %v2876_v10 }
  0xa6   : > { %1490 = vmatpush1.bf16.msra.mxu0 %v2874_v12 }
  0xa7   : > { %1491 = vmatprep.subr.bf16.mxu0 %v2879_v13 }
  0xa9   : > { %2664 = vmatmul.mubr.msk.bf16.gmra.mxu1 %vm1366_vm6, %v2926_v36  ;;  %vm1697_vm6 = vcmask 138240  }
  0xaa   : > { %1492 = vmatpush1.bf16.msra.mxu0 %v2877_v14  ;;  %1738 = vmatprep.mubr.bf16.mxu1 %v2963_v37 }
  0xab   : > { %1493 = vmatprep.subr.bf16.mxu0 %v2882_v15 }
  0xae   : > { %1494 = vmatpush1.bf16.msra.mxu0 %v2880_v16 }
  0xaf   : > { %1495 = vmatprep.subr.bf16.mxu0 %v2885_v17 }
  0xb2   : > { %1496 = vmatpush2.bf16.msra.mxu0 %v2883_v18 }
  0xb3   : > { %1497 = vmatprep.subr.bf16.mxu0 %v2888_v19 }
  0xb6   : > { %1498 = vmatpush2.bf16.msra.mxu0 %v2886_v20 }
  0xb7   : > { %1499 = vmatprep.subr.bf16.mxu0 %v2891_v21 }
  0xba   : > { %1500 = vmatpush2.bf16.msra.mxu0 %v2889_v22 }
  0xbb   : > { %1501 = vmatprep.subr.bf16.mxu0 %v2894_v23 }
  0xbe   : > { %1502 = vmatpush2.bf16.msra.mxu0 %v2892_v24 }
  0xbf   : > { %1503 = vmatprep.subr.bf16.mxu0 %v2897_v25 }
  0xc2   : > { %1504 = vmatpush2.bf16.msra.mxu0 %v2895_v26 }
  0xc3   : > { %1505 = vmatprep.subr.bf16.mxu0 %v2906_v27 }
  0xc6   : > { %1506 = vmatpush2.bf16.msra.mxu0 %v2904_v28 }
  0xc7   : > { %1507 = vmatprep.subr.bf16.mxu0 %v2912_v29 }
  0xca   : > { %1508 = vmatpush2.bf16.msra.mxu0 %v2910_v30 }
  0xcb   : > { %1509 = vmatprep.subr.bf16.mxu0 %v2918_v31 }
  0xce   : > { %1510 = vmatpush2.bf16.msra.mxu0 %v2916_v32 }
  0xd1   : > { %1512 = vmatmul.mubr.bf16.vlgmr.msra.gmra.mxu0 %v2920_v33 }
  0xd2   : > { %1521 = vmatprep.mubr.bf16.mxu0 %v2923_v34 }
  0xd9   : > { %1522 = vmatmul.mubr.bf16.gmra.mxu0 %v2925_v35 }
  0xda   : > { %2258 = vmatprep.mubr.bf16.mxu0 %v2963_v37 }
  0xdf   : > { %v1661_v21 = vpop.permute.xlu1 %1660 }
  0xe0   : > { %v1662_v22 = vrot.slane %v1661_v21, 4 }
  0xe2   : > { %v1664_v24 = vsel %vm1663_vm7, %v1662_v22, %v1661_v21  ;;  %vm1666_vm9 = vcmp.ne.s16.totalorder %v1662_v22, 0 }
  0xe3   : > { %vm1665_vm8 = vcmp.ne.s16.totalorder %v1664_v24, 0  ;;  %v1837_v33 = vpop.permute.xlu1 %1836 }
  0xe4   : > { %v1838_v36 = vrot.slane %v1837_v33, 4 }
  0xe6   : > { %vm1842_vm13 = vcmp.ne.s16.totalorder %v1838_v36, 0 }
  0xeb   : > { %v779_v50 = vpop.permute.xlu0 %778 }
  0xef   : > { %v784_v55 = vpop.permute.xlu0 %783 }
 0x151   : > { %v1460_v38 = vpop.f32.mrf.mxu1  ;;  %v1407_v40 = vpop.f32.mrf.mxu0 }
 0x152   : > { %v1408_v54 = vadd.f32 %v1407_v40, %v779_v50 }
 0x153   : > { %v1462_v39 = vpop.f32.mrf.mxu1  ;;  %v1409_v42 = vpop.f32.mrf.mxu0 }
 0x154   : > { %v1410_v57 = vadd.f32 %v1409_v42, %v779_v50  ;;  %v1461_v59 = vadd.f32 %v1460_v38, %v1408_v54  ;;  %v1929_v38 = vpop.permute.xlu0 %1928 }
 0x155   : > { %v1464_v41 = vpop.f32.mrf.mxu1  ;;  %v1411_v44 = vpop.f32.mrf.mxu0  ;;  %v1930_v42 = vrot.slane %v1929_v38, 4 }
 0x156   : > { %v1412_v60 = vadd.f32 %v1411_v44, %v784_v55  ;;  %v1463_v63 = vadd.f32 %v1462_v39, %v1410_v57 }
 0x157   : > { %v1466_v43 = vpop.f32.mrf.mxu1  ;;  %v1413_v46 = vpop.f32.mrf.mxu0  ;;  %vm1934_vm0 = vcmp.ne.s16.totalorder %v1930_v42, 0 }
 0x158   : > { %v1414_v0 = vadd.f32 %v1413_v46, %v784_v55  ;;  %v1465_v3 = vadd.f32 %v1464_v41, %v1412_v60  ;;  %v1840_v41 = vsel %vm1839_vm10, %v1838_v36, %v1837_v33  ;;  %v1932_v46 = vsel %vm1931_vm11, %v1930_v42, %v1929_v38  ;;  %v2184_v57 = vpop.permute.xlu0 %2183 }
 0x159   : > { %v3445_v45 = vpop.f32.mrf.mxu1  ;;  %v3449_v48 = vpop.f32.mrf.mxu0  ;;  %vm1841_vm12 = vcmp.ne.s16.totalorder %v1840_v41, 0  ;;  %vm1933_vm14 = vcmp.ne.s16.totalorder %v1932_v46, 0 }
 0x15a   : > { %v1467_v8 = vadd.f32 %v1466_v43, %v1414_v0  ;;  %v2185_v0 = vrot.slane %v2184_v57, 4 }
 0x15b   : > { %v3447_v47 = vpop.f32.mrf.mxu1  ;;  %v3453_v51 = vpop.f32.mrf.mxu0 }
 0x15c   : > { %vm3504_vm1 = vcmp.ne.s16.totalorder %v2185_v0, 0 }
 0x15d   : > { %v3451_v49 = vpop.f32.mrf.mxu1  ;;  %v3457_v53 = vpop.f32.mrf.mxu0 }
 0x15f   : > { %v3455_v52 = vpop.f32.mrf.mxu1  ;;  %v3459_v58 = vpop.f32.mrf.mxu0 }
 0x161   : > { %v1566_v56 = vpop.f32.mrf.mxu1 }
 0x163   : > { %v1568_v61 = vpop.f32.mrf.mxu1 }
 0x165   : > { %v1570_v6 = vpop.f32.mrf.mxu1 }
 0x167   : > { %v1572_v16 = vpop.f32.mrf.mxu1 }
 0x191   : > { %v1513_v62 = vpop.f32.mrf.mxu0 }
 0x192   : > { %v1514_v1 = vadd.f32 %v1513_v62, %v1461_v59  ;;  %v2094_v59 = vpop.permute.xlu1 %2093 }
 0x193   : > { %v1515_v2 = vpop.f32.mrf.mxu0  ;;  %v2095_v62 = vrot.slane %v2094_v59, 4 }
 0x194   : > { %v3461_v4 = vadd.f32 %v1566_v56, %v1514_v1  ;;  %v1516_v5 = vadd.f32 %v1515_v2, %v1463_v63  ;;  %v2090_v1 = vld [vmem:[#allocation2 + $0xc] sm:$0xf] }
 0x195   : > { %v1517_v7 = vpop.f32.mrf.mxu0  ;;  %vm3500_vm15 = vcmp.ne.s16.totalorder %v2095_v62, 0  ;;  %v2190_v21 = vsel %vm3504_vm1, %v2090_v1, 0 }
 0x196   : > { %v3463_v9 = vadd.f32 %v1568_v61, %v1516_v5  ;;  %v1518_v10 = vadd.f32 %v1517_v7, %v1465_v3  ;;  %v1585_v12 = vmax.f32 %v3461_v4, 0.0  ;;  %v2092_v5 = vld [vmem:[#allocation2 + $0x1c] sm:$0xf]  ;;  %v774_v4 = vld [vmem:[%s3651_s2 + $0x10] sm:$0xff] }
 0x197   : > { %v1519_v11 = vpop.f32.mrf.mxu0  ;;  %v2192_v22 = vsel %vm3504_vm1, %v2092_v5, 0 }
 0x198   : > { %v1586_v13 = vmax.f32 %v3463_v9, 0.0  ;;  %v3467_v14 = vadd.f32 %v1570_v6, %v1518_v10  ;;  %v1520_v15 = vadd.f32 %v1519_v11, %v1467_v8  ;;  %v2100_v11 = vsel %vm3500_vm15, %v2090_v1, 0 }
 0x19a   : > { %v3473_v17 = vpack.c.bf16 %v1586_v13, %v1585_v12  ;;  %v3475_v18 = vadd.f32 %v1572_v16, %v1520_v15  ;;  %v1587_v19 = vmax.f32 %v3467_v14, 0.0  ;;  %v2102_v15 = vsel %vm3500_vm15, %v2092_v5, 0  ;;  %v1590_v14 = vld [vmem:[%s3653_s4 + $0x8] sm:$0xff] }
 0x19c   : > { %1621 = vst [vmem:[#allocation2 + $0x4] sm:$0xff] %v3473_v17  ;;  %v1588_v20 = vmax.f32 %v3475_v18, 0.0 }
 0x19e   : > { %v3484_v23 = vpack.c.bf16 %v1588_v20, %v1587_v19 }
 0x1a0   : > { %1622 = vst [vmem:[#allocation2 + $0x14] sm:$0xff] %v3484_v23 }
 0x1a3   : > { %v1654_v25 = vld [vmem:[#allocation2] sm:$0xff]  ;;  %v3488_v26 = vld [vmem:[#allocation2 + $0x8] sm:$0xf] }
 0x1a4   : > { %v1668_v29 = vsel %vm1666_vm9, %v3488_v26, 0  ;;  %v1667_v31 = vsel %vm1665_vm8, %v1654_v25, 0  ;;  %v1843_v55 = vsel %vm1841_vm12, %v1654_v25, 0  ;;  %v1844_v56 = vsel %vm1842_vm13, %v3488_v26, 0 }
 0x1a5   : > { %v1935_v3 = vsel %vm1933_vm14, %v1654_v25, 0  ;;  %v1936_v16 = vsel %vm1934_vm0, %v3488_v26, 0 }
 0x1a7   : > { %v1656_v27 = vld [vmem:[#allocation2 + $0x10] sm:$0xff]  ;;  %v1657_v28 = vld [vmem:[#allocation2 + $0x18] sm:$0xf] }
 0x1a8   : > { %v1670_v30 = vsel %vm1666_vm9, %v1657_v28, 0  ;;  %v1669_v32 = vsel %vm1665_vm8, %v1656_v27, 0  ;;  %v2674_v39 = vcombine.high %v1654_v25, %v1656_v27  ;;  %v2673_v43 = vcombine.low %v1654_v25, %v1656_v27 }
 0x1a9   : > { %v2670_v34 = vcombine.low %v1668_v29, %v1670_v30  ;;  %v2669_v35 = vcombine.high %v1667_v31, %v1669_v32  ;;  %v2668_v40 = vcombine.low %v1667_v31, %v1669_v32  ;;  %v2675_v44 = vcombine.low %v3488_v26, %v1657_v28  ;;  %v2355_v31 = vpop.permute.xlu1 %2354 }
 0x1aa   : > { %v1846_v50 = vsel %vm1842_vm13, %v1657_v28, 0  ;;  %v1845_v54 = vsel %vm1841_vm12, %v1656_v27, 0  ;;  %v1937_v63 = vsel %vm1933_vm14, %v1656_v27, 0  ;;  %v1938_v10 = vsel %vm1934_vm0, %v1657_v28, 0 }
 0x1ab   : > { %1695 = vrot.lane.b32.xlu1 %v2670_v34, %s2969_s7  ;;  %1693 = vrot.lane.b32.xlu0 %v2669_v35, %s2969_s7  ;;  %v2680_v60 = vcombine.low %v1844_v56, %v1846_v50  ;;  %v2679_v61 = vcombine.high %v1843_v55, %v1845_v54  ;;  %v2684_v7 = vcombine.high %v1935_v3, %v1937_v63  ;;  %v2356_v35 = vrot.slane %v2355_v31, 4 }
 0x1ac   : > { %v2678_v8 = vcombine.low %v1843_v55, %v1845_v54  ;;  %v2683_v24 = vcombine.low %v1935_v3, %v1937_v63  ;;  %v2685_v25 = vcombine.low %v1936_v16, %v1938_v10  ;;  %v2096_v27 = vsel %vm1965_vm2, %v2095_v62, %v2094_v59  ;;  %v2930_v16 = vld [vmem:[%s3652_s3 + $0x10] sm:$0xff]  }
 0x1ad   : > { %v2694_v28 = vcombine.low %v2100_v11, %v2102_v15  ;;  %v2699_v29 = vcombine.low %v2190_v21, %v2192_v22  ;;  %vm2097_vm4 = vcmp.ne.s16.totalorder %v2096_v27, 0  ;;  %v2186_v30 = vsel %vm1873_vm3, %v2185_v0, %v2184_v57 }
 0x1ae   : > { %v2101_v26 = vsel %vm2097_vm4, %v3484_v23, 0  ;;  %v2704_v32 = vcombine.low %v2090_v1, %v2092_v5  ;;  %v2099_v33 = vsel %vm2097_vm4, %v3473_v17, 0  ;;  %vm2187_vm5 = vcmp.ne.s16.totalorder %v2186_v30, 0 }
 0x1af   : > { %1775 = vrot.lane.b32.xlu1 %v2674_v39, %s2970_s15  ;;  %1691 = vrot.lane.b32.xlu0 %v2668_v40, %s2969_s7  ;;  %v2693_v34 = vcombine.high %v2099_v33, %v2101_v26  ;;  %v2191_v36 = vsel %vm2187_vm5, %v3484_v23, 0  ;;  %v2189_v38 = vsel %vm2187_vm5, %v3473_v17, 0  ;;  %v2692_v40 = vcombine.low %v2099_v33, %v2101_v26 }
 0x1b0   : > { %v2698_v39 = vcombine.high %v2189_v38, %v2191_v36  ;;  %v2357_v41 = vsel %vm1697_vm6, %v2356_v35, %v2355_v31  ;;  %vm2359_vm9 = vcmp.ne.s16.totalorder %v2356_v35, 0  ;;  %v2697_v42 = vcombine.low %v2189_v38, %v2191_v36  ;;  %v2932_v35 = vld [vmem:[%s3652_s3 + $0x20] sm:$0xff]   ;;  %v2933_v36 = vld [vmem:[%s3652_s3 + $0x30] sm:$0xff]  }
 0x1b1   : > { %vm2358_vm8 = vcmp.ne.s16.totalorder %v2357_v41, 0  ;;  %v2361_v50 = vsel %vm2359_vm9, %v2090_v1, 0  ;;  %v2363_v54 = vsel %vm2359_vm9, %v2092_v5, 0  ;;  %v3544_v56 = vpack.c.bf16 %v1587_v19, %v1585_v12  ;;  %v1589_v12 = vld [vmem:[%s3653_s4] sm:$0xff]  ;;  %v2929_v5 = vld [vmem:[%s3652_s3 + $0x8] sm:$0xff]  }
 0x1b2   : > { %v2360_v46 = vsel %vm2358_vm8, %v3473_v17, 0  ;;  %v2709_v9 = vcombine.low %v2361_v50, %v2363_v54  ;;  %v775_v17 = vld [vmem:[%s3651_s2 + $0x18] sm:$0xff]  ;;  %vm1702_vm12 = vcmask 130048   ;;  %vm2299_vm13 = vcmask 916480   ;;  %v2934_v50 = vld [vmem:[%s3652_s3 + $0x28] sm:$0xff]   ;;  %v2936_v54 = vld [vmem:[%s3652_s3 + $0x40] sm:$0xff]  }
 0x1b3   : > { %1773 = vrot.lane.b32.xlu1 %v2673_v43, %s2970_s15  ;;  %1777 = vrot.lane.b32.xlu0 %v2675_v44, %s2970_s15  ;;  %v2937_v43 = vpack.c.bf16 %v1588_v20, %v1586_v13  ;;  %v2362_v44 = vsel %vm2358_vm8, %v3484_v23, 0 }
 0x1b4   : > { %v2708_v55 = vcombine.high %v2360_v46, %v2362_v44  ;;  %v2707_v13 = vcombine.low %v2360_v46, %v2362_v44 }
 0x1b7   : > { %1871 = vrot.lane.b32.xlu1 %v2680_v60, %s2968_s6  ;;  %1869 = vrot.lane.b32.xlu0 %v2679_v61, %s2968_s6  ;;  %v2928_v60 = vld [vmem:[%s3652_s3] sm:$0xff]  }
 0x1bb   : > { %1961 = vrot.lane.b32.xlu1 %v2684_v7, %s2967_s30  ;;  %1867 = vrot.lane.b32.xlu0 %v2678_v8, %s2968_s6 }
 0x1bf   : > { %1959 = vrot.lane.b32.xlu1 %v2683_v24, %s2967_s30  ;;  %1963 = vrot.lane.b32.xlu0 %v2685_v25, %s2967_s30 }
 0x1c3   : > { %2127 = vrot.lane.b32.xlu1 %v2694_v28, %s2966_s29  ;;  %2217 = vrot.lane.b32.xlu0 %v2699_v29, %s2965_s24  ;;  %v2931_v28 = vld [vmem:[%s3652_s3 + $0x18] sm:$0xff]  }
 0x1c7   : > { %2297 = vrot.lane.b32.xlu1 %v2704_v32, %s2971_s27  ;;  %2125 = vrot.lane.b32.xlu0 %v2693_v34, %s2966_s29 }
 0x1cb   : > { %2215 = vrot.lane.b32.xlu1 %v2698_v39, %s2965_s24  ;;  %2123 = vrot.lane.b32.xlu0 %v2692_v40, %s2966_s29 }
 0x1cf   : > { %2213 = vrot.lane.b32.xlu1 %v2697_v42, %s2965_s24  ;;  %2295 = vrot.lane.b32.xlu0 %v2937_v43, %s2971_s27 }
 0x1d3   : > { %2386 = vrot.lane.b32.xlu1 %v2708_v55, %s2964_s23  ;;  %2293 = vrot.lane.b32.xlu0 %v3544_v56, %s2971_s27 }
 0x1d7   : > { %2384 = vrot.lane.b32.xlu1 %v2707_v13, %s2964_s23  ;;  %2388 = vrot.lane.b32.xlu0 %v2709_v9, %s2964_s23  ;;  %v1576_v9 = vpop.f32.mrf.mxu1 }
 0x1d9   : > { %v1578_v13 = vpop.f32.mrf.mxu1 }
 0x1db   : > { %793 = vperm.xlu1 %2756, %v775_v17   ;;  %788 = vperm.xlu0 %2755, %v774_v4   ;;  %v1580_v17 = vpop.f32.mrf.mxu1 }
 0x1dd   : > { %v1582_v4 = vpop.f32.mrf.mxu1 }
 0x1df   : > { %1593 = vperm.xlu0 %2755, %v1589_v12   ;;  %1598 = vperm.xlu1 %2756, %v1590_v14  }
 0x21d   : > { %v1696_v18 = vpop.permute.xlu1 %1695  ;;  %v1694_v19 = vpop.permute.xlu0 %1693 }
 0x21e   : > { %v1699_v20 = vsel %vm1697_vm6, %v1694_v19, %v1696_v18 }
 0x21f   : > { %1720 = vmatprep.subr.bf16.mxu1 %v1699_v20 }
 0x221   : > { %v1776_v23 = vpop.permute.xlu1 %1775  ;;  %v1692_v57 = vpop.permute.xlu0 %1691 }
 0x222   : > { %v1698_v59 = vsel %vm1697_vm6, %v1692_v57, %v1694_v19 }
 0x223   : > { %1721 = vmatpush1.bf16.msra.mxu1 %v1698_v59  ;;  %v1523_v59 = vpop.f32.mrf.mxu0 }
 0x225   : > { %v1774_v61 = vpop.permute.xlu1 %1773  ;;  %v1778_v62 = vpop.permute.xlu0 %1777 }
 0x226   : > { %v1780_v63 = vsel %vm1702_vm12, %v1774_v61, %v1776_v23  ;;  %2671 = vmatmul.mubr.msk.bf16.vlgmr.msra.gmra.mxu1 %vm1702_vm12, %v2928_v60  ;;  %v1781_v0 = vsel %vm1702_vm12, %v1776_v23, %v1778_v62 }
 0x227   : > { %1801 = vmatprep.subr.bf16.mxu1 %v1781_v0  ;;  %1819 = vmatprep.mubr.bf16.mxu1 %v2963_v37 }
 0x228   : > { %1802 = vmatpush1.bf16.msra.mxu1 %v1780_v63 }
 0x229   : > { %v1872_v1 = vpop.permute.xlu1 %1871  ;;  %v1870_v2 = vpop.permute.xlu0 %1869 }
 0x22a   : > { %v1875_v3 = vsel %vm1873_vm3, %v1870_v2, %v1872_v1  ;;  %v1525_v1 = vpop.f32.mrf.mxu0 }
 0x22b   : > { %1895 = vmatprep.subr.bf16.mxu1 %v1875_v3 }
 0x22d   : > { %v1962_v6 = vpop.permute.xlu1 %1961  ;;  %v1868_v7 = vpop.permute.xlu0 %1867 }
 0x22e   : > { %v1874_v8 = vsel %vm1873_vm3, %v1868_v7, %v1870_v2  ;;  %2676 = vmatmul.mubr.msk.bf16.vlgmr.msra.gmra.mxu1 %vm1702_vm12, %v2929_v5 }
 0x22f   : > { %1896 = vmatpush1.bf16.msra.mxu1 %v1874_v8  ;;  %1913 = vmatprep.mubr.bf16.mxu1 %v2963_v37 }
 0x231   : > { %v1960_v10 = vpop.permute.xlu1 %1959  ;;  %v1964_v11 = vpop.permute.xlu0 %1963 }
 0x232   : > { %v1967_v15 = vsel %vm1965_vm2, %v1962_v6, %v1964_v11  ;;  %v1966_v24 = vsel %vm1965_vm2, %v1960_v10, %v1962_v6  ;;  %v1527_v10 = vpop.f32.mrf.mxu0 }
 0x233   : > { %1987 = vmatprep.subr.bf16.mxu1 %v1967_v15 }
 0x235   : > { %v2128_v21 = vpop.permute.xlu1 %2127  ;;  %v2218_v22 = vpop.permute.xlu0 %2217 }
 0x236   : > { %2681 = vmatmul.mubr.msk.bf16.vlgmr.msra.gmra.mxu1 %vm1702_vm12, %v2930_v16 }
 0x237   : > { %1988 = vmatpush1.bf16.msra.mxu1 %v1966_v24  ;;  %2005 = vmatprep.mubr.bf16.mxu1 %v2963_v37 }
 0x238   : > { %2056 = vmatprep.subr.bf16.mxu1 %v2937_v43 }
 0x239   : > { %v2298_v25 = vpop.permute.xlu1 %2297  ;;  %v2126_v27 = vpop.permute.xlu0 %2125 }
 0x23a   : > { %v2130_v31 = vsel %vm1931_vm11, %v2126_v27, %v2128_v21 }
 0x23d   : > { %v2216_v29 = vpop.permute.xlu1 %2215  ;;  %v2124_v26 = vpop.permute.xlu0 %2123 }
 0x23e   : > { %2686 = vmatmul.mubr.msk.bf16.vlgmr.msra.gmra.mxu1 %vm1702_vm12, %v2931_v28  ;;  %v2220_v30 = vsel %vm1839_vm10, %v2216_v29, %v2218_v22  ;;  %v2129_v40 = vsel %vm1931_vm11, %v2124_v26, %v2126_v27  ;;  %v1529_v22 = vpop.f32.mrf.mxu0 }
 0x23f   : > { %2057 = vmatpush1.bf16.msra.mxu1 %v3544_v56  ;;  %2240 = vmatprep.subr.bf16.mxu0 %v2220_v30  ;;  %v2935_v56 = vld [vmem:[%s3652_s3 + $0x38] sm:$0xff]  }
 0x240   : > { %2150 = vmatprep.subr.bf16.mxu1 %v2130_v31  ;;  %2074 = vmatprep.mubr.bf16.mxu1 %v2963_v37 }
 0x241   : > { %v2214_v32 = vpop.permute.xlu1 %2213  ;;  %v2296_v33 = vpop.permute.xlu0 %2295 }
 0x242   : > { %v2219_v34 = vsel %vm1839_vm10, %v2214_v32, %v2216_v29  ;;  %v2301_v41 = vsel %vm2299_vm13, %v2296_v33, %v2298_v25 }
 0x243   : > { %2241 = vmatpush1.bf16.msra.mxu0 %v2219_v34 }
 0x245   : > { %v2387_v38 = vpop.permute.xlu1 %2386  ;;  %v2294_v39 = vpop.permute.xlu0 %2293 }
 0x246   : > { %2690 = vmatmul.mubr.msk.bf16.vlgmr.msra.gmra.mxu1 %vm1702_vm12, %v2932_v35  ;;  %2700 = vmatmul.mubr.msk.bf16.vlgmr.msra.gmra.mxu0 %vm1702_vm12, %v2933_v36  ;;  %v2300_v55 = vsel %vm2299_vm13, %v2294_v39, %v2296_v33 }
 0x247   : > { %2151 = vmatpush1.bf16.msra.mxu1 %v2129_v40  ;;  %2168 = vmatprep.mubr.bf16.mxu1 %v2963_v37 }
 0x248   : > { %2321 = vmatprep.subr.bf16.mxu1 %v2301_v41  ;;  %2429 = vmatprep.mubr.bf16.mxu0 %v2963_v37 }
 0x249   : > { %v2385_v42 = vpop.permute.xlu1 %2384  ;;  %v2389_v43 = vpop.permute.xlu0 %2388 }
 0x24a   : > { %v2390_v44 = vsel %vm1663_vm7, %v2385_v42, %v2387_v38  ;;  %v2391_v46 = vsel %vm1663_vm7, %v2387_v38, %v2389_v43 }
 0x24b   : > { %2411 = vmatprep.subr.bf16.mxu0 %v2391_v46 }
 0x24c   : > { %2412 = vmatpush1.bf16.msra.mxu0 %v2390_v44 }
 0x24e   : > { %2695 = vmatmul.mubr.msk.bf16.vlgmr.msra.gmra.mxu1 %vm1702_vm12, %v2934_v50 }
 0x24f   : > { %2322 = vmatpush1.bf16.msra.mxu1 %v2300_v55  ;;  %2339 = vmatprep.mubr.bf16.mxu1 %v2963_v37 }
 0x250   : > { %2710 = vmatmul.mubr.msk.bf16.vlgmr.msra.gmra.mxu0 %vm1702_vm12, %v2936_v54 }
 0x256   : > { %2705 = vmatmul.mubr.msk.bf16.vlgmr.msra.gmra.mxu1 %vm1702_vm12, %v2935_v56  ;;  %v789_v57 = vpop.permute.xlu0 %788  ;;  %v794_v62 = vpop.permute.xlu1 %793 }
 0x257   : > { %v1418_v61 = vadd.f32 %v3449_v48, %v789_v57  ;;  %v1420_v0 = vadd.f32 %v3453_v51, %v789_v57  ;;  %v1422_v3 = vadd.f32 %v3457_v53, %v794_v62  ;;  %v1424_v7 = vadd.f32 %v3459_v58, %v794_v62 }
 0x259   : > { %v1471_v5 = vadd.f32 %v3445_v45, %v1418_v61  ;;  %v1473_v8 = vadd.f32 %v3447_v47, %v1420_v0  ;;  %v1475_v15 = vadd.f32 %v3451_v49, %v1422_v3  ;;  %v1477_v51 = vadd.f32 %v3455_v52, %v1424_v7 }
 0x25a   : > { %v1594_v29 = vpop.permute.xlu0 %1593  ;;  %v1599_v30 = vpop.permute.xlu1 %1598 }
 0x25b   : > { %v1524_v48 = vadd.f32 %v1523_v59, %v1471_v5  ;;  %v1526_v21 = vadd.f32 %v1525_v1, %v1473_v8  ;;  %v1528_v25 = vadd.f32 %v1527_v10, %v1475_v15  ;;  %v1530_v28 = vadd.f32 %v1529_v22, %v1477_v51 }
 0x25d   : > { %v1577_v53 = vadd.f32 %v1576_v9, %v1524_v48  ;;  %v1579_v45 = vadd.f32 %v1578_v13, %v1526_v21  ;;  %v1581_v26 = vadd.f32 %v1580_v17, %v1528_v25  ;;  %v1583_v33 = vadd.f32 %v1582_v4, %v1530_v28 }
 0x25f   : > { %v1601_v47 = vadd.f32 %v1594_v29, %v1577_v53  ;;  %v1602_v49 = vadd.f32 %v1594_v29, %v1579_v45  ;;  %v1603_v52 = vadd.f32 %v1599_v30, %v1581_v26  ;;  %v1604_v42 = vadd.f32 %v1599_v30, %v1583_v33 }
 0x2e6   : > { %v1740_v12 = vpop.f32.mrf.mxu1 }
 0x2e7   : > { %v1749_v34 = vadd.f32 %v1740_v12, %v1601_v47 }
 0x2e8   : > { %v1742_v14 = vpop.f32.mrf.mxu1 }
 0x2e9   : > { %v1750_v38 = vadd.f32 %v1742_v14, %v1602_v49 }
 0x2ea   : > { %v1744_v18 = vpop.f32.mrf.mxu1 }
 0x2eb   : > { %v1751_v43 = vadd.f32 %v1744_v18, %v1603_v52 }
 0x2ec   : > { %v1746_v19 = vpop.f32.mrf.mxu1 }
 0x2ed   : > { %v1752_v54 = vadd.f32 %v1746_v19, %v1604_v42 }
 0x2ee   : > { %v1821_v20 = vpop.f32.mrf.mxu1 }
 0x2ef   : > { %v1830_v39 = vadd.f32 %v1821_v20, %v1749_v34 }
 0x2f0   : > { %v1823_v23 = vpop.f32.mrf.mxu1 }
 0x2f1   : > { %v1831_v44 = vadd.f32 %v1823_v23, %v1750_v38 }
 0x2f2   : > { %v1825_v37 = vpop.f32.mrf.mxu1 }
 0x2f3   : > { %v1832_v55 = vadd.f32 %v1825_v37, %v1751_v43 }
 0x2f4   : > { %v1827_v60 = vpop.f32.mrf.mxu1 }
 0x2f5   : > { %v1833_v4 = vadd.f32 %v1827_v60, %v1752_v54 }
 0x2f6   : > { %v1915_v63 = vpop.f32.mrf.mxu1 }
 0x2f7   : > { %v1924_v46 = vadd.f32 %v1915_v63, %v1830_v39 }
 0x2f8   : > { %v1917_v2 = vpop.f32.mrf.mxu1 }
 0x2f9   : > { %v1925_v56 = vadd.f32 %v1917_v2, %v1831_v44 }
 0x2fa   : > { %v1919_v6 = vpop.f32.mrf.mxu1 }
 0x2fb   : > { %v1926_v12 = vadd.f32 %v1919_v6, %v1832_v55 }
 0x2fc   : > { %v1921_v11 = vpop.f32.mrf.mxu1 }
 0x2fd   : > { %v1927_v14 = vadd.f32 %v1921_v11, %v1833_v4 }
 0x2fe   : > { %v2007_v16 = vpop.f32.mrf.mxu1 }
 0x2ff   : > { %v2016_v9 = vadd.f32 %v2007_v16, %v1924_v46 }
 0x300   : > { %v2009_v24 = vpop.f32.mrf.mxu1 }
 0x301   : > { %v2017_v57 = vadd.f32 %v2009_v24, %v1925_v56 }
 0x302   : > { %v2011_v27 = vpop.f32.mrf.mxu1 }
 0x303   : > { %v2018_v20 = vadd.f32 %v2011_v27, %v1926_v12 }
 0x304   : > { %v2013_v58 = vpop.f32.mrf.mxu1 }
 0x305   : > { %v2019_v63 = vadd.f32 %v2013_v58, %v1927_v14 }
 0x306   : > { %v2076_v31 = vpop.f32.mrf.mxu1  ;;  %v2260_v32 = vpop.f32.mrf.mxu0 }
 0x307   : > { %v2085_v59 = vadd.f32 %v2076_v31, %v2016_v9 }
 0x308   : > { %v2078_v35 = vpop.f32.mrf.mxu1  ;;  %v2262_v36 = vpop.f32.mrf.mxu0 }
 0x309   : > { %v2086_v62 = vadd.f32 %v2078_v35, %v2017_v57 }
 0x30a   : > { %v2080_v40 = vpop.f32.mrf.mxu1  ;;  %v2264_v41 = vpop.f32.mrf.mxu0 }
 0x30b   : > { %v2087_v1 = vadd.f32 %v2080_v40, %v2018_v20 }
 0x30c   : > { %v2082_v50 = vpop.f32.mrf.mxu1  ;;  %v2266_v17 = vpop.f32.mrf.mxu0 }
 0x30d   : > { %v2088_v2 = vadd.f32 %v2082_v50, %v2019_v63 }
 0x30e   : > { %v2170_v13 = vpop.f32.mrf.mxu1 }
 0x30f   : > { %v2179_v0 = vadd.f32 %v2170_v13, %v2085_v59 }
 0x310   : > { %v2172_v61 = vpop.f32.mrf.mxu1  ;;  %v2431_v23 = vpop.f32.mrf.mxu0 }
 0x311   : > { %v2180_v19 = vadd.f32 %v2172_v61, %v2086_v62  ;;  %v2269_v3 = vadd.f32 %v2260_v32, %v2179_v0 }
 0x312   : > { %v2174_v18 = vpop.f32.mrf.mxu1  ;;  %v2433_v60 = vpop.f32.mrf.mxu0 }
 0x313   : > { %v2181_v5 = vadd.f32 %v2174_v18, %v2087_v1  ;;  %v2270_v6 = vadd.f32 %v2262_v36, %v2180_v19 }
 0x314   : > { %v2176_v37 = vpop.f32.mrf.mxu1  ;;  %v2435_v51 = vpop.f32.mrf.mxu0 }
 0x315   : > { %v2182_v8 = vadd.f32 %v2176_v37, %v2088_v2  ;;  %v2271_v15 = vadd.f32 %v2264_v41, %v2181_v5 }
 0x316   : > { %v2341_v7 = vpop.f32.mrf.mxu1  ;;  %v2437_v58 = vpop.f32.mrf.mxu0 }
 0x317   : > { %v2350_v10 = vadd.f32 %v2341_v7, %v2269_v3  ;;  %v2272_v22 = vadd.f32 %v2266_v17, %v2182_v8 }
 0x318   : > { %v2343_v11 = vpop.f32.mrf.mxu1 }
 0x319   : > { %v2351_v48 = vadd.f32 %v2343_v11, %v2270_v6  ;;  %v2440_v16 = vadd.f32 %v2431_v23, %v2350_v10 }
 0x31a   : > { %v2345_v21 = vpop.f32.mrf.mxu1 }
 0x31b   : > { %v2444_v24 = vmax.f32 %v2440_v16, 0.0  ;;  %v2352_v25 = vadd.f32 %v2345_v21, %v2271_v15  ;;  %v2441_v53 = vadd.f32 %v2433_v60, %v2351_v48 }
 0x31c   : > { %v2347_v27 = vpop.f32.mrf.mxu1 }
 0x31d   : > { %2448 = vst [vmem:[%s650_s12] sm:$0xff] %v2444_v24  ;;  %v2445_v45 = vmax.f32 %v2441_v53, 0.0  ;;  %v2353_v28 = vadd.f32 %v2347_v27, %v2272_v22  ;;  %v2442_v29 = vadd.f32 %v2435_v51, %v2352_v25 }
 0x31f   : > { %2449 = vst [vmem:[%s650_s12 + $0x8] sm:$0xff] %v2445_v45  ;;  %v2446_v26 = vmax.f32 %v2442_v29, 0.0  ;;  %v2443_v47 = vadd.f32 %v2437_v58, %v2353_v28  ;;  %2458 = sbr.rel (!%p3032_p5) target bundleno = 812 (0x32c), region = 82 }
 0x321   : > { %2450 = vst [vmem:[%s650_s12 + $0x10] sm:$0xff] %v2446_v26  ;;  %v2447_v30 = vmax.f32 %v2443_v47, 0.0 }
 0x323   : > { %2451 = vst [vmem:[%s650_s12 + $0x18] sm:$0xff] %v2447_v30 }
 0x324   : > { %v2474_v31 = vld [vmem:[%s650_s12] sm:$0xff] }
 0x325   : > { %2475 = vst [vmem:[%s2461_s14] sm:$0xff] %v2474_v31 }
 0x326   : > { %v2476_v32 = vld [vmem:[%s650_s12 + $0x8] sm:$0xff] }
 0x327   : > { %2477 = vst [vmem:[%s2461_s14 + $0x8] sm:$0xff] %v2476_v32 }
 0x328   : > { %v2478_v49 = vld [vmem:[%s650_s12 + $0x10] sm:$0xff] }
 0x329   : > { %2479 = vst [vmem:[%s2461_s14 + $0x20] sm:$0xff] %v2478_v49 }
 0x32a   : > { %v2480_v33 = vld [vmem:[%s650_s12 + $0x18] sm:$0xff] }
 0x32b   : > { %2481 = vst [vmem:[%s2461_s14 + $0x28] sm:$0xff] %v2480_v33 }
 0x32c PF: > { %p12_p10 = scmp.ge.s32.totalorder %s3019_s22, 4   ;;  %s3668_s18 = smov %s2957_s19 }
 0x32d   : > { %s3669_s19 = smov %s3030_s25  ;;  %s3670_s20 = smov %s3019_s22 }
 0x32e   :  { %14 = sbr.rel (!%p12_p10) target bundleno = 2 (0x2), region = 136 }

</bundles_post_ra>
